<compile_context>
chip_gen: v6e
topology: v6e:2x2x1
jax: 0.10.0
libtpu: 0.0.40
codegen_flags: <defaults>
</compile_context>

<pallas_src>
import jax
import jax.numpy as jnp
from jax.experimental import pallas as pl
from jax.experimental.pallas import tpu as pltpu


def _round_up(x, m):
    return (x + m - 1) // m * m


def _critic_kernel(s_ref, a_ref, w1s_ref, w1a_ref, b1_ref,
                   w2_ref, b2_ref, w3_ref, b3_ref, o_ref):
    # Layer 1: split matmul (state-part + action-part) -> relu.
    # bf16 operands, f32 accumulation on the MXU.
    h = jnp.dot(s_ref[...], w1s_ref[...], preferred_element_type=jnp.float32)
    h = h + jnp.dot(a_ref[...], w1a_ref[...],
                    preferred_element_type=jnp.float32)
    h = jnp.maximum(h + b1_ref[...], 0.0)

    # Layer 2: [TB, 512] @ [512, 384] -> relu.
    h = jnp.dot(h.astype(jnp.bfloat16), w2_ref[...],
                preferred_element_type=jnp.float32)
    h = jnp.maximum(h + b2_ref[...], 0.0)

    # Layer 3: [TB, 384] @ [384, 128] (only lane 0 is the logical Q value).
    q = jnp.dot(h.astype(jnp.bfloat16), w3_ref[...],
                preferred_element_type=jnp.float32)
    # bf16 writeback halves output HBM traffic (lane-dense, unmasked stores).
    o_ref[...] = (q + b3_ref[...]).astype(o_ref.dtype)


def init_params(key, state_dim, action_dim):
    """PyTorch-style uniform(-1/sqrt(fan_in), 1/sqrt(fan_in)) init.

    Weights stored as [in, out] (transposed vs nn.Linear), biases as [1, out],
    at the *logical* (unpadded) sizes, in f32.
    """
    d_in = state_dim + action_dim
    dims = [(d_in, 400), (400, 300), (300, 1)]
    params = {}
    keys = jax.random.split(key, 2 * len(dims))
    for i, (fan_in, fan_out) in enumerate(dims):
        bound = 1.0 / jnp.sqrt(jnp.float32(fan_in))
        params[f"w{i+1}"] = jax.random.uniform(
            keys[2 * i], (fan_in, fan_out), minval=-bound, maxval=bound,
            dtype=jnp.float32)
        params[f"b{i+1}"] = jax.random.uniform(
            keys[2 * i + 1], (1, fan_out), minval=-bound, maxval=bound,
            dtype=jnp.float32)
    return params


def pack_params(params, state_dim):
    """Split W1 by input source, pad feature dims to multiples of 128,
    cast weights to bf16 (biases stay f32)."""
    def pad_cols_w(w, cp):
        return jnp.pad(w, ((0, 0), (0, cp - w.shape[1]))).astype(jnp.bfloat16)

    def pad_w(w, rp, cp):
        r, c = w.shape
        return jnp.pad(w, ((0, rp - r), (0, cp - c))).astype(jnp.bfloat16)

    def pad_b(b, cp):
        return jnp.pad(b, ((0, 0), (0, cp - b.shape[1]))).astype(jnp.float32)

    h1 = params["w1"].shape[1]
    h2 = params["w2"].shape[1]
    out = params["w3"].shape[1]
    h1_p = _round_up(h1, 128)      # 400 -> 512
    h2_p = _round_up(h2, 128)      # 300 -> 384
    out_p = _round_up(out, 128)    # 1   -> 128

    w1 = params["w1"]
    w1s = w1[:state_dim, :]        # [state_dim, 400]
    w1a = w1[state_dim:, :]        # [action_dim, 400]

    return {
        "w1s": pad_cols_w(w1s, h1_p),           # [state_dim, 512]  bf16
        "w1a": pad_cols_w(w1a, h1_p),           # [action_dim, 512] bf16
        "b1": pad_b(params["b1"], h1_p),
        "w2": pad_w(params["w2"], h1_p, h2_p),  # [512, 384] bf16
        "b2": pad_b(params["b2"], h2_p),
        "w3": pad_w(params["w3"], h2_p, out_p),  # [384, 128] bf16
        "b3": pad_b(params["b3"], out_p),
    }


def car_critic_forward(state, action, packed):
    """state: [B, state_dim], action: [B, action_dim]. Returns Q: [B, 1] f32."""
    w1s, w1a, b1 = packed["w1s"], packed["w1a"], packed["b1"]
    w2, b2 = packed["w2"], packed["b2"]
    w3, b3 = packed["w3"], packed["b3"]

    B, state_dim = state.shape
    action_dim = action.shape[1]
    h1_p = w1s.shape[1]
    h2_p = w2.shape[1]
    out_p = w3.shape[1]

    # Batch tiling: tiles are multiples of 128 (lane-dense, low per-step
    # overhead).  For padded batches >= 256 force >= 2 grid steps so the
    # "parallel" axis shards across v7x's two TensorCores; cap tb at 1024 so
    # the VMEM footprint stays well under v5e's 16 MiB scoped default.
    if B <= 128:
        b_pad = 128
        tb = 128
    else:
        b_pad = _round_up(B, 256)
        tb = min(1024, b_pad // 2)
        b_pad = _round_up(b_pad, tb)
    grid = (b_pad // tb,)

    # Batch-pad only (no feature padding of the inputs) and cast to bf16 in
    # the wrapper so the kernel reads half the activation bytes.
    s_p = jnp.pad(state.astype(jnp.bfloat16), ((0, b_pad - B), (0, 0)))
    a_p = jnp.pad(action.astype(jnp.bfloat16), ((0, b_pad - B), (0, 0)))

    flops = 2 * b_pad * ((state_dim + action_dim) * h1_p
                         + h1_p * h2_p + h2_p * out_p)
    bytes_accessed = ((s_p.size + a_p.size) * 2          # bf16 inputs
                      + b_pad * out_p * 2                 # bf16 output slab
                      + (w1s.size + w1a.size + w2.size + w3.size) * 2
                      + (b1.size + b2.size + b3.size) * 4)

    out = pl.pallas_call(
        _critic_kernel,
        out_shape=jax.ShapeDtypeStruct((b_pad, out_p), jnp.bfloat16),
        grid=grid,
        in_specs=[
            pl.BlockSpec((tb, state_dim), lambda i: (i, 0)),    # state tile
            pl.BlockSpec((tb, action_dim), lambda i: (i, 0)),   # action tile
            pl.BlockSpec((state_dim, h1_p), lambda i: (0, 0)),  # w1_state
            pl.BlockSpec((action_dim, h1_p), lambda i: (0, 0)),  # w1_action
            pl.BlockSpec((1, h1_p), lambda i: (0, 0)),          # b1
            pl.BlockSpec((h1_p, h2_p), lambda i: (0, 0)),       # w2
            pl.BlockSpec((1, h2_p), lambda i: (0, 0)),          # b2
            pl.BlockSpec((h2_p, out_p), lambda i: (0, 0)),      # w3
            pl.BlockSpec((1, out_p), lambda i: (0, 0)),         # b3
        ],
        out_specs=pl.BlockSpec((tb, out_p), lambda i: (i, 0)),
        compiler_params=pltpu.CompilerParams(
            dimension_semantics=("parallel",)),
        cost_estimate=pl.CostEstimate(
            flops=flops, transcendentals=0, bytes_accessed=bytes_accessed),
    )(s_p, a_p, w1s, w1a, b1, w2, b2, w3, b3)

    # Strip batch padding and lane padding: logical critic output is [B, 1].
    return out[:B, :1].astype(jnp.float32)


if __name__ == "__main__":
    B = 2
    state_dim = 16
    action_dim = 4

    key = jax.random.PRNGKey(0)
    k_params, k_state, k_action = jax.random.split(key, 3)

    params = init_params(k_params, state_dim, action_dim)
    packed = pack_params(params, state_dim)

    state = jax.random.normal(k_state, (B, state_dim), dtype=jnp.float32)
    action = jax.random.normal(k_action, (B, action_dim), dtype=jnp.float32)

    q = car_critic_forward(state, action, packed)
    q = jax.block_until_ready(q)

    # Reference in plain JAX using the same bf16-rounded weights/inputs
    # (f32 math).  bf16 activations inside the kernel -> loosened tolerance.
    w1 = params["w1"].astype(jnp.bfloat16).astype(jnp.float32)
    w2 = params["w2"].astype(jnp.bfloat16).astype(jnp.float32)
    w3 = params["w3"].astype(jnp.bfloat16).astype(jnp.float32)
    sa = jnp.concatenate(
        [state.astype(jnp.bfloat16).astype(jnp.float32),
         action.astype(jnp.bfloat16).astype(jnp.float32)], axis=1)
    h = jnp.maximum(sa @ w1 + params["b1"], 0.0)
    h = jnp.maximum(h @ w2 + params["b2"], 0.0)
    ref = h @ w3 + params["b3"]

    assert q.shape == (B, 1)
    assert jnp.allclose(q, ref, atol=5e-2, rtol=5e-2), (q, ref)

    print("KERNEL_OK")
</pallas_src>

<mosaic_0001>
module attributes {stable_mosaic.version = 11 : i64} {
  func.func @_critic_kernel(%arg0: i32, %arg1: memref<128x16xbf16, #tpu.memory_space<vmem>>, %arg2: memref<128x4xbf16, #tpu.memory_space<vmem>>, %arg3: memref<16x512xbf16, #tpu.memory_space<vmem>>, %arg4: memref<4x512xbf16, #tpu.memory_space<vmem>>, %arg5: memref<1x512xf32, #tpu.memory_space<vmem>>, %arg6: memref<512x384xbf16, #tpu.memory_space<vmem>>, %arg7: memref<1x384xf32, #tpu.memory_space<vmem>>, %arg8: memref<384x128xbf16, #tpu.memory_space<vmem>>, %arg9: memref<1x128xf32, #tpu.memory_space<vmem>>, %arg10: memref<128x128xbf16, #tpu.memory_space<vmem>>) attributes {dimension_semantics = [#tpu.dimension_semantics<parallel>], iteration_bounds = array<i64: 1>, scalar_prefetch = 0 : i64, scratch_operands = 0 : i64, tpu.core_type = #tpu.core_type<tc>, window_params = [{transform_indices = @transform_0, window_bounds = array<i64: 128, 16>}, {transform_indices = @transform_1, window_bounds = array<i64: 128, 4>}, {pipeline_mode = #tpu.pipeline_mode<synchronous>, transform_indices = @transform_2, window_bounds = array<i64: 16, 512>}, {pipeline_mode = #tpu.pipeline_mode<synchronous>, transform_indices = @transform_3, window_bounds = array<i64: 4, 512>}, {pipeline_mode = #tpu.pipeline_mode<synchronous>, transform_indices = @transform_4, window_bounds = array<i64: 1, 512>}, {pipeline_mode = #tpu.pipeline_mode<synchronous>, transform_indices = @transform_5, window_bounds = array<i64: 512, 384>}, {pipeline_mode = #tpu.pipeline_mode<synchronous>, transform_indices = @transform_6, window_bounds = array<i64: 1, 384>}, {pipeline_mode = #tpu.pipeline_mode<synchronous>, transform_indices = @transform_7, window_bounds = array<i64: 384, 128>}, {pipeline_mode = #tpu.pipeline_mode<synchronous>, transform_indices = @transform_8, window_bounds = array<i64: 1, 128>}, {transform_indices = @transform_9, window_bounds = array<i64: 128, 128>}]} {
    %c0 = arith.constant 0 : index
    %c0_0 = arith.constant 0 : index
    %0 = vector.load %arg1[%c0, %c0_0] : memref<128x16xbf16, #tpu.memory_space<vmem>>, vector<128x16xbf16>
    %c0_1 = arith.constant 0 : index
    %c0_2 = arith.constant 0 : index
    %1 = vector.load %arg3[%c0_1, %c0_2] : memref<16x512xbf16, #tpu.memory_space<vmem>>, vector<16x512xbf16>
    %cst = arith.constant dense<0.000000e+00> : vector<128x512xf32>
    %2 = tpu.matmul %0, %1, %cst {dimension_numbers = #tpu.dot_dimension_numbers<[1], [0], [0], [1], [0, 0, 1, 1], [], []>} : vector<128x16xbf16>, vector<16x512xbf16>, vector<128x512xf32> -> vector<128x512xf32>
    %c0_3 = arith.constant 0 : index
    %c0_4 = arith.constant 0 : index
    %3 = vector.load %arg2[%c0_3, %c0_4] : memref<128x4xbf16, #tpu.memory_space<vmem>>, vector<128x4xbf16>
    %c0_5 = arith.constant 0 : index
    %c0_6 = arith.constant 0 : index
    %4 = vector.load %arg4[%c0_5, %c0_6] : memref<4x512xbf16, #tpu.memory_space<vmem>>, vector<4x512xbf16>
    %cst_7 = arith.constant dense<0.000000e+00> : vector<128x512xf32>
    %5 = tpu.matmul %3, %4, %cst_7 {dimension_numbers = #tpu.dot_dimension_numbers<[1], [0], [0], [1], [0, 0, 1, 1], [], []>} : vector<128x4xbf16>, vector<4x512xbf16>, vector<128x512xf32> -> vector<128x512xf32>
    %6 = arith.addf %2, %5 : vector<128x512xf32>
    %c0_8 = arith.constant 0 : index
    %c0_9 = arith.constant 0 : index
    %7 = vector.load %arg5[%c0_8, %c0_9] : memref<1x512xf32, #tpu.memory_space<vmem>>, vector<1x512xf32>
    %8 = vector.broadcast %7 : vector<1x512xf32> to vector<128x512xf32>
    %9 = arith.addf %6, %8 : vector<128x512xf32>
    %cst_10 = arith.constant 0.000000e+00 : f32
    %10 = vector.broadcast %cst_10 : f32 to vector<128x512xf32>
    %11 = arith.maximumf %9, %10 : vector<128x512xf32>
    %12 = arith.truncf %11 : vector<128x512xf32> to vector<128x512xbf16>
    %c0_11 = arith.constant 0 : index
    %c0_12 = arith.constant 0 : index
    %13 = vector.load %arg6[%c0_11, %c0_12] : memref<512x384xbf16, #tpu.memory_space<vmem>>, vector<512x384xbf16>
    %cst_13 = arith.constant dense<0.000000e+00> : vector<128x384xf32>
    %14 = tpu.matmul %12, %13, %cst_13 {dimension_numbers = #tpu.dot_dimension_numbers<[1], [0], [0], [1], [0, 0, 1, 1], [], []>} : vector<128x512xbf16>, vector<512x384xbf16>, vector<128x384xf32> -> vector<128x384xf32>
    %c0_14 = arith.constant 0 : index
    %c0_15 = arith.constant 0 : index
    %15 = vector.load %arg7[%c0_14, %c0_15] : memref<1x384xf32, #tpu.memory_space<vmem>>, vector<1x384xf32>
    %16 = vector.broadcast %15 : vector<1x384xf32> to vector<128x384xf32>
    %17 = arith.addf %14, %16 : vector<128x384xf32>
    %cst_16 = arith.constant 0.000000e+00 : f32
    %18 = vector.broadcast %cst_16 : f32 to vector<128x384xf32>
    %19 = arith.maximumf %17, %18 : vector<128x384xf32>
    %20 = arith.truncf %19 : vector<128x384xf32> to vector<128x384xbf16>
    %c0_17 = arith.constant 0 : index
    %c0_18 = arith.constant 0 : index
    %21 = vector.load %arg8[%c0_17, %c0_18] : memref<384x128xbf16, #tpu.memory_space<vmem>>, vector<384x128xbf16>
    %cst_19 = arith.constant dense<0.000000e+00> : vector<128x128xf32>
    %22 = tpu.matmul %20, %21, %cst_19 {dimension_numbers = #tpu.dot_dimension_numbers<[1], [0], [0], [1], [0, 0, 1, 1], [], []>} : vector<128x384xbf16>, vector<384x128xbf16>, vector<128x128xf32> -> vector<128x128xf32>
    %c0_20 = arith.constant 0 : index
    %c0_21 = arith.constant 0 : index
    %23 = vector.load %arg9[%c0_20, %c0_21] : memref<1x128xf32, #tpu.memory_space<vmem>>, vector<1x128xf32>
    %24 = vector.broadcast %23 : vector<1x128xf32> to vector<128x128xf32>
    %25 = arith.addf %22, %24 : vector<128x128xf32>
    %26 = arith.truncf %25 : vector<128x128xf32> to vector<128x128xbf16>
    %c0_22 = arith.constant 0 : index
    %c0_23 = arith.constant 0 : index
    %27 = vector.load %arg10[%c0_22, %c0_23] : memref<128x128xbf16, #tpu.memory_space<vmem>>, vector<128x128xbf16>
    tpu.vector_store %arg10[%c0_22, %c0_23], %26 {strides = array<i32>} : memref<128x128xbf16, #tpu.memory_space<vmem>>, vector<128x128xbf16>,
    return
  }
  func.func @transform_0(%arg0: i32) -> (i32, i32) {
    %c0_i32 = arith.constant 0 : i32
    %c0_i32_0 = arith.constant 0 : i32
    return %arg0, %c0_i32 : i32, i32
  }
  func.func @transform_1(%arg0: i32) -> (i32, i32) {
    %c0_i32 = arith.constant 0 : i32
    %c0_i32_0 = arith.constant 0 : i32
    return %arg0, %c0_i32 : i32, i32
  }
  func.func @transform_2(%arg0: i32) -> (i32, i32) {
    %c0_i32 = arith.constant 0 : i32
    %c0_i32_0 = arith.constant 0 : i32
    %c0_i32_1 = arith.constant 0 : i32
    return %c0_i32, %c0_i32_0 : i32, i32
  }
  func.func @transform_3(%arg0: i32) -> (i32, i32) {
    %c0_i32 = arith.constant 0 : i32
    %c0_i32_0 = arith.constant 0 : i32
    %c0_i32_1 = arith.constant 0 : i32
    return %c0_i32, %c0_i32_0 : i32, i32
  }
  func.func @transform_4(%arg0: i32) -> (i32, i32) {
    %c0_i32 = arith.constant 0 : i32
    %c0_i32_0 = arith.constant 0 : i32
    %c0_i32_1 = arith.constant 0 : i32
    return %c0_i32, %c0_i32_0 : i32, i32
  }
  func.func @transform_5(%arg0: i32) -> (i32, i32) {
    %c0_i32 = arith.constant 0 : i32
    %c0_i32_0 = arith.constant 0 : i32
    %c0_i32_1 = arith.constant 0 : i32
    return %c0_i32, %c0_i32_0 : i32, i32
  }
  func.func @transform_6(%arg0: i32) -> (i32, i32) {
    %c0_i32 = arith.constant 0 : i32
    %c0_i32_0 = arith.constant 0 : i32
    %c0_i32_1 = arith.constant 0 : i32
    return %c0_i32, %c0_i32_0 : i32, i32
  }
  func.func @transform_7(%arg0: i32) -> (i32, i32) {
    %c0_i32 = arith.constant 0 : i32
    %c0_i32_0 = arith.constant 0 : i32
    %c0_i32_1 = arith.constant 0 : i32
    return %c0_i32, %c0_i32_0 : i32, i32
  }
  func.func @transform_8(%arg0: i32) -> (i32, i32) {
    %c0_i32 = arith.constant 0 : i32
    %c0_i32_0 = arith.constant 0 : i32
    %c0_i32_1 = arith.constant 0 : i32
    return %c0_i32, %c0_i32_0 : i32, i32
  }
  func.func @transform_9(%arg0: i32) -> (i32, i32) {
    %c0_i32 = arith.constant 0 : i32
    %c0_i32_0 = arith.constant 0 : i32
    return %arg0, %c0_i32 : i32, i32
  }
}

</mosaic_0001>

<bundles_post_ra>
// kernel: tpu_custom_call.1
= control target key start
LH: loop header
LB: loop body
LE: loop exit
PB: predicated region body
PF: predicated region fallthrough
CT: control target
= control target key end

     0   :  { %14 = vsyncpa [#allocation3], 0  ;;  %s4131_s0 = inlined_call_operand.vmem [shape: bf16[128,16], index: 0, kind: input, shape index: {}]   ;;  %s4132_s1 = inlined_call_operand.vmem [shape: bf16[128,4], index: 1, kind: input, shape index: {}]   ;;  %s4133_s2 = inlined_call_operand.vmem [shape: bf16[16,512], index: 2, kind: input, shape index: {}]   ;;  %s4134_s3 = inlined_call_operand.vmem [shape: bf16[4,512], index: 3, kind: input, shape index: {}]   ;;  %s4135_s4 = inlined_call_operand.vmem [shape: f32[1,512], index: 4, kind: input, shape index: {}]   ;;  %s4136_s5 = inlined_call_operand.hbm [shape: bf16[512,384], index: 5, kind: input, shape index: {}]   ;;  %s4137_s6 = inlined_call_operand.vmem [shape: f32[1,384], index: 6, kind: input, shape index: {}]   ;;  %s4138_s7 = inlined_call_operand.hbm [shape: bf16[384,128], index: 7, kind: input, shape index: {}]   ;;  %s4139_s8 = inlined_call_operand.vmem [shape: f32[1,128], index: 8, kind: input, shape index: {}]   ;;  %s4140_s9 = inlined_call_operand.hbm [shape: bf16[128,128], index: 9, kind: output, shape index: {}]  }
   0x1   :  { %15 = vsyncpa [#allocation6], 0 }
   0x2   :  { %16 = vsyncpa [#allocation4], 0  ;;  %s3301_s30 = smov [#allocation2]  }
   0x3   :  { %s32_s10 = sshll.u32 %s3301_s30, 4  ;;  %s33_s10 = int_to_ptr.vmem [resolvable:$true] %s32_s10 }
   0x4   :  { %s3243_s11 = scalar_lea.vmem %s33_s10, 12288  ;;  %p3248_p1 = scmp.lt.s32.totalorder %s33_s10, %s33_s10 }
   0x5   :  { %p3244_p0 = scmp.ne.s32.totalorder %s33_s10, %s3243_s11  ;;  %p3249_p2 = scmp.lt.s32.totalorder %s3243_s11, %s3243_s11 }
   0x7   :  { %p3250_p3 = por %p3249_p2, %p3248_p1 }
   0x9   :  { %p3251_p4 = pnand %p3250_p3, %p3244_p0 }
   0xb   :  { %3254 = shalt.err (!%p3251_p4)
}
   0xc   :  { %s3302_s12 = smov 192   ;;  %s3303_s13 = smov 12  }
   0xd   :  { %38 = dma.hbm_to_vmem [thread:$0]  %s4136_s5, 12288, %s33_s10, [#allocation3], %s3302_s12, %s3302_s12, %s3303_s13  }
   0xe   :  { %s3304_s16 = smov [#allocation5]  }
   0xf   :  { %s46_s17 = sshll.u32 %s3304_s16, 4  ;;  %s47_s17 = int_to_ptr.vmem [resolvable:$true] %s46_s17 }
  0x10   :  { %s3263_s18 = scalar_lea.vmem %s47_s17, 3072  ;;  %p3268_p6 = scmp.lt.s32.totalorder %s47_s17, %s47_s17 }
  0x11   :  { %p3264_p5 = scmp.ne.s32.totalorder %s47_s17, %s3263_s18  ;;  %p3269_p7 = scmp.lt.s32.totalorder %s3263_s18, %s3263_s18 }
  0x13   :  { %p3270_p8 = por %p3269_p7, %p3268_p6 }
  0x15   :  { %p3271_p9 = pnand %p3270_p8, %p3264_p5 }
  0x17   :  { %3274 = shalt.err (!%p3271_p9)
}
  0x18   :  { %s3305_s19 = smov 64   ;;  %s3306_s20 = smov 4  }
  0x19   :  { %52 = dma.hbm_to_vmem [thread:$0]  %s4138_s7, 3072, %s47_s17, [#allocation6], %s3305_s19, %s3305_s19, %s3306_s20  }
  0x1a   :  { %3295 = dma.done.wait [#allocation3], 12288  }
  0x1b   :  { %3296 = vsyncadd [#allocation3], 4294955008 }
  0x1c   :  { %3297 = dma.done.wait [#allocation6], 3072  }
  0x1d   :  { %3298 = vsyncadd [#allocation6], 4294964224  ;;  %v144_v0 = vlaneseq  ;;  %v3307_v1 = vmov 1983009808   ;;  %v3308_v3 = vmov 0   ;;  %v98_v7 = vld [vmem:[%s4134_s3] sm:$0xff] }
  0x1e   :  { %v142_v2 = vunpack.c.l.s4 %v3307_v1  ;;  %227 = vmatprep.mubr.bf16.mxu0 %v3308_v3  ;;  %287 = vmatprep.mubr.bf16.mxu1 %v3308_v3  ;;  %vm182_vm0 = vcmask 1041408   ;;  %v140_v8 = vcombine.high %v98_v7, %v98_v7  ;;  %v1042_v11 = vld [vmem:[%s4137_s6] sm:$0x7]  ;;  %v3061_v17 = vld [vmem:[%s4132_s1 + $0x30] sm:$0xff]   ;;  %vm157_vm1 = vcmask 31744   ;;  %v3062_v23 = vld [vmem:[%s4132_s1 + $0x8] sm:$0xff]  }
  0x1f   :  { %v3371_v4 = vshrl.u32 %v144_v0, 7  ;;  %v3060_v16 = vld [vmem:[%s4132_s1] sm:$0xff]   ;;  %v3067_v20 = vld [vmem:[%s4133_s2 + $0xc] ss:$16 sps:$4 sm:$0xff]   ;;  %v3064_v25 = vld [vmem:[%s4132_s1 + $0x10] sm:$0xff]   ;;  %vm481_vm2 = vcmask 130048  }
  0x20   :  { %v143_v5 = vunpack.c.0.s8 %v142_v2  ;;  %v3069_v21 = vld [vmem:[%s4133_s2] ss:$16 sps:$4 sm:$0xff]   ;;  %v3071_v22 = vld [vmem:[%s4133_s2 + $0x4] ss:$16 sps:$4 sm:$0xff]   ;;  %v3063_v24 = vld [vmem:[%s4132_s1 + $0x38] sm:$0xff]  }
  0x21   :  { %4149 = vst [vmem:[#allocation11_spill] sm:$0xff] %v3371_v4  ;;  %v4141_v10 = vsub.s32 2, %v3371_v4  ;;  %v3065_v26 = vld [vmem:[%s4133_s2 + $0x8] ss:$16 sps:$4 sm:$0xff]   ;;  %v3072_v28 = vld [vmem:[%s4132_s1 + $0x20] sm:$0xff]   ;;  %v3076_v32 = vld [vmem:[%s4131_s0 + $0x10] sm:$0xff]  }
  0x22   :  { %v146_v6 = vsub.s32 %v143_v5, %v3371_v4  ;;  %v3068_v27 = vld [vmem:[%s4132_s1 + $0x18] sm:$0xff]   ;;  %v3073_v29 = vld [vmem:[%s4132_s1 + $0x28] sm:$0xff]   ;;  %v3074_v30 = vld [vmem:[%s4131_s0] sm:$0xff]  }
  0x23   :  { %v3383_v14 = vrot.slane %v1042_v11, %v4141_v10  ;;  %v3075_v31 = vld [vmem:[%s4131_s0 + $0x8] sm:$0xff]   ;;  %v3474_v35 = vld [vmem:[%s4131_s0 + $0x18] sm:$0xff]   ;;  %v3087_v36 = vld [vmem:[#allocation2 + $0x94] ss:$12 sps:$4 sm:$0xff]  }
  0x24   :  { %v147_v9 = vrot.slane %v98_v7, %v146_v6  ;;  %v154_v12 = vrot.slane %v140_v8, %v146_v6  ;;  %v3084_v33 = vld [vmem:[#allocation2 + $0xac] ss:$12 sps:$4 sm:$0xff]   ;;  %v3082_v34 = vld [vmem:[#allocation2 + $0xa8] ss:$12 sps:$4 sm:$0xff]   ;;  %v3085_v37 = vld [vmem:[#allocation2 + $0x90] ss:$12 sps:$4 sm:$0xff]  }
  0x25   :  { %4150 = vst [vmem:[#allocation12_spill] sm:$0xff] %v3383_v14  ;;  %v3090_v38 = vld [vmem:[#allocation2 + $0x7c] ss:$12 sps:$4 sm:$0xff]   ;;  %v3088_v39 = vld [vmem:[#allocation2 + $0x78] ss:$12 sps:$4 sm:$0xff]   ;;  %v3504_v52 = vld [vmem:[%s4131_s0 + $0x30] sm:$0xff]  }
  0x26   :  { %v155_v13 = vcombine.high %v147_v9, %v147_v9  ;;  %v184_v15 = vsel %vm182_vm0, %v147_v9, 0  ;;  %v156_v18 = vcombine.high %v154_v12, %v154_v12  ;;  %v190_v19 = vsel %vm182_vm0, %v154_v12, 0  ;;  %v3093_v40 = vld [vmem:[#allocation2 + $0x64] ss:$12 sps:$4 sm:$0xff]   ;;  %v3091_v41 = vld [vmem:[#allocation2 + $0x60] ss:$12 sps:$4 sm:$0xff]  }
  0x27   :  { %v3484_v42 = vld [vmem:[%s4131_s0 + $0x20] sm:$0xff]   ;;  %v3096_v43 = vld [vmem:[#allocation2 + $0x4c] ss:$12 sps:$4 sm:$0xff]   ;;  %v3094_v44 = vld [vmem:[#allocation2 + $0x48] ss:$12 sps:$4 sm:$0xff]  }
  0x28   :  { %2562 = vmatprep.subr.msk.bf16.mxu0 %vm182_vm0, %v155_v13  ;;  %3048 = vmatprep.subr.msk.bf16.mxu1 %vm182_vm0, %v155_v13  ;;  %v3099_v45 = vld [vmem:[#allocation2 + $0x34] ss:$12 sps:$4 sm:$0xff]   ;;  %v3097_v46 = vld [vmem:[#allocation2 + $0x30] ss:$12 sps:$4 sm:$0xff]   ;;  %v3494_v47 = vld [vmem:[%s4131_s0 + $0x28] sm:$0xff]  }
  0x29   :  { %210 = vmatpush1.bf16.msra.mxu0 %v184_v15  ;;  %3049 = vmatpush1.bf16.msra.mxu1 %v184_v15  ;;  %v3102_v48 = vld [vmem:[#allocation2 + $0x1c] ss:$12 sps:$4 sm:$0xff]   ;;  %v3100_v49 = vld [vmem:[#allocation2 + $0x18] ss:$12 sps:$4 sm:$0xff]   ;;  %v3103_v51 = vld [vmem:[#allocation2] ss:$12 sps:$4 sm:$0xff]  }
  0x2a   :  { %2571 = vmatprep.subr.msk.bf16.mxu1 %vm182_vm0, %v156_v18  ;;  %520 = vmatprep.subr.bf16.mxu0 %v3071_v22  ;;  %v3105_v50 = vld [vmem:[#allocation2 + $0x4] ss:$12 sps:$4 sm:$0xff]   ;;  %v3108_v53 = vld [vmem:[#allocation2 + $0x16c] ss:$12 sps:$4 sm:$0xff]   ;;  %v3106_v55 = vld [vmem:[#allocation2 + $0x168] ss:$12 sps:$4 sm:$0xff]  }
  0x2b   :  { %v3111_v54 = vld [vmem:[#allocation2 + $0x22c] ss:$12 sps:$4 sm:$0xff]   ;;  %v3109_v56 = vld [vmem:[#allocation2 + $0x228] ss:$12 sps:$4 sm:$0xff]   ;;  %v3112_v59 = vld [vmem:[#allocation2 + $0x150] ss:$12 sps:$4 sm:$0xff]  }
  0x2c   :  { %2563 = vmatmul.mubr.msk.bf16.vlgmr.msra.gmra.mxu0 %vm157_vm1, %v3060_v16  ;;  %2569 = vmatmul.mubr.msk.bf16.vlgmr.msra.gmra.mxu1 %vm157_vm1, %v3061_v17  ;;  %v3114_v57 = vld [vmem:[#allocation2 + $0x154] ss:$12 sps:$4 sm:$0xff]   ;;  %v3115_v60 = vld [vmem:[#allocation2 + $0x210] ss:$12 sps:$4 sm:$0xff]   ;;  %v3118_v0 = vld [vmem:[#allocation2 + $0x138] ss:$12 sps:$4 sm:$0xff]  }
  0x2d   :  { %323 = vmatpush1.bf16.msra.mxu1 %v190_v19  ;;  %237 = vmatprep.mubr.bf16.mxu0 %v3308_v3  ;;  %v3117_v58 = vld [vmem:[#allocation2 + $0x214] ss:$12 sps:$4 sm:$0xff]   ;;  %v3514_v61 = vld [vmem:[%s4131_s0 + $0x38] sm:$0xff]   ;;  %v3126_v2 = vld [vmem:[#allocation2 + $0x124] ss:$12 sps:$4 sm:$0xff]  }
  0x2e   :  { %297 = vmatprep.mubr.bf16.mxu1 %v3308_v3  ;;  %633 = vmatprep.subr.bf16.mxu1 %v3067_v20  ;;  %v3120_v62 = vld [vmem:[#allocation2 + $0x13c] ss:$12 sps:$4 sm:$0xff]   ;;  %v3121_v1 = vld [vmem:[#allocation2 + $0x1f8] ss:$12 sps:$4 sm:$0xff]   ;;  %v3124_v6 = vld [vmem:[#allocation2 + $0x120] ss:$12 sps:$4 sm:$0xff]  }
  0x2f   :  { %521 = vmatpush1.bf16.msra.mxu0 %v3069_v21  ;;  %v3123_v63 = vld [vmem:[#allocation2 + $0x1fc] ss:$12 sps:$4 sm:$0xff]   ;;  %v3129_v5 = vld [vmem:[#allocation2 + $0x1e4] ss:$12 sps:$4 sm:$0xff]   ;;  %v3127_v7 = vld [vmem:[#allocation2 + $0x1e0] ss:$12 sps:$4 sm:$0xff]  }
  0x30   :  { %1571 = vmatprep.subr.bf16.mxu0 %v3084_v33  ;;  %v3132_v8 = vld [vmem:[#allocation2 + $0x10c] ss:$12 sps:$4 sm:$0xff]   ;;  %v3130_v11 = vld [vmem:[#allocation2 + $0x108] ss:$12 sps:$4 sm:$0xff]   ;;  %v3150_v22 = vld [vmem:[#allocation2 + $0xc4] ss:$12 sps:$4 sm:$0xff]  }
  0x31   :  { %v3135_v9 = vld [vmem:[#allocation2 + $0x1cc] ss:$12 sps:$4 sm:$0xff]   ;;  %v3133_v12 = vld [vmem:[#allocation2 + $0x1c8] ss:$12 sps:$4 sm:$0xff]  }
  0x32   :  { %v3138_v13 = vld [vmem:[#allocation2 + $0xf4] ss:$12 sps:$4 sm:$0xff]   ;;  %v3144_v18 = vld [vmem:[#allocation2 + $0xdc] ss:$12 sps:$4 sm:$0xff]   ;;  %v3142_v20 = vld [vmem:[#allocation2 + $0xd8] ss:$12 sps:$4 sm:$0xff]  }
  0x33   :  { %v3141_v15 = vld [vmem:[#allocation2 + $0x1b4] ss:$12 sps:$4 sm:$0xff]   ;;  %v3147_v19 = vld [vmem:[#allocation2 + $0x19c] ss:$12 sps:$4 sm:$0xff]   ;;  %v3145_v21 = vld [vmem:[#allocation2 + $0x198] ss:$12 sps:$4 sm:$0xff]  }
  0x34   :  { %2564 = vmatmul.mubr.msk.bf16.gmra.mxu0 %vm157_vm1, %v3062_v23  ;;  %2570 = vmatmul.mubr.msk.bf16.gmra.mxu1 %vm157_vm1, %v3063_v24  ;;  %v3163_v33 = vld [vmem:[#allocation2 + $0x2a0] ss:$12 sps:$4 sm:$0xff]  }
  0x35   :  { %247 = vmatprep.mubr.bf16.mxu0 %v3308_v3  ;;  %340 = vmatprep.mubr.bf16.mxu1 %v3308_v3 }
  0x3c   :  { %2565 = vmatmul.mubr.msk.bf16.gmra.mxu0 %vm157_vm1, %v3064_v25  ;;  %2572 = vmatmul.mubr.msk.bf16.vlgmr.msra.gmra.mxu1 %vm157_vm1, %v3060_v16  ;;  %v3136_v16 = vld [vmem:[#allocation2 + $0xf0] ss:$12 sps:$4 sm:$0xff]  }
  0x3d   :  { %634 = vmatpush1.bf16.msra.mxu1 %v3065_v26  ;;  %257 = vmatprep.mubr.bf16.mxu0 %v3308_v3  ;;  %v3156_v26 = vld [vmem:[#allocation2 + $0x2ec] ss:$12 sps:$4 sm:$0xff]  }
  0x3e   :  { %350 = vmatprep.mubr.bf16.mxu1 %v3308_v3  ;;  %1684 = vmatprep.subr.bf16.mxu1 %v3111_v54 }
  0x44   :  { %2566 = vmatmul.mubr.msk.bf16.gmra.mxu0 %vm157_vm1, %v3068_v27  ;;  %2573 = vmatmul.mubr.msk.bf16.gmra.mxu1 %vm157_vm1, %v3062_v23  ;;  %v3153_v23 = vld [vmem:[#allocation2 + $0x184] ss:$12 sps:$4 sm:$0xff]  }
  0x45   :  { %267 = vmatprep.mubr.bf16.mxu0 %v3308_v3  ;;  %360 = vmatprep.mubr.bf16.mxu1 %v3308_v3 }
  0x4c   :  { %2567 = vmatmul.mubr.msk.bf16.gmra.mxu0 %vm157_vm1, %v3072_v28  ;;  %2574 = vmatmul.mubr.msk.bf16.gmra.mxu1 %vm157_vm1, %v3064_v25  ;;  %v3151_v25 = vld [vmem:[#allocation2 + $0x180] ss:$12 sps:$4 sm:$0xff]  }
  0x4d   :  { %277 = vmatprep.mubr.bf16.mxu0 %v3308_v3  ;;  %370 = vmatprep.mubr.bf16.mxu1 %v3308_v3 }
  0x54   :  { %2568 = vmatmul.mubr.msk.bf16.gmra.mxu0 %vm157_vm1, %v3073_v29  ;;  %2575 = vmatmul.mubr.msk.bf16.gmra.mxu1 %vm157_vm1, %v3068_v27  ;;  %v3154_v27 = vld [vmem:[#allocation2 + $0x2e8] ss:$12 sps:$4 sm:$0xff]  }
  0x55   :  { %380 = vmatprep.mubr.bf16.mxu1 %v3308_v3  ;;  %538 = vmatprep.mubr.bf16.mxu0 %v3308_v3 }
  0x5c   :  { %2576 = vmatmul.mubr.msk.bf16.gmra.mxu1 %vm157_vm1, %v3072_v28  ;;  %2592 = vmatmul.mubr.msk.bf16.vlgmr.msra.gmra.mxu0 %vm481_vm2, %v3074_v30  ;;  %v3159_v28 = vld [vmem:[#allocation2 + $0x2d4] ss:$12 sps:$4 sm:$0xff]  }
  0x5d   :  { %390 = vmatprep.mubr.bf16.mxu1 %v3308_v3  ;;  %548 = vmatprep.mubr.bf16.mxu0 %v3308_v3 }
  0x5e   :  { %1572 = vmatpush1.bf16.msra.mxu0 %v3082_v34  ;;  %v3168_v34 = vld [vmem:[#allocation2 + $0x28c] ss:$12 sps:$4 sm:$0xff]  }
  0x5f   :  { %1573 = vmatprep.subr.bf16.mxu0 %v3087_v36  ;;  %v3169_v36 = vld [vmem:[#allocation2 + $0x270] ss:$12 sps:$4 sm:$0xff]  }
  0x62   :  { %1574 = vmatpush1.bf16.msra.mxu0 %v3085_v37  ;;  %v3174_v37 = vld [vmem:[#allocation2 + $0x25c] ss:$12 sps:$4 sm:$0xff]  }
  0x63   :  { %1575 = vmatprep.subr.bf16.mxu0 %v3090_v38  ;;  %v3172_v38 = vld [vmem:[#allocation2 + $0x258] ss:$12 sps:$4 sm:$0xff]  }
  0x64   :  { %2577 = vmatmul.mubr.msk.bf16.gmra.mxu1 %vm157_vm1, %v3073_v29  ;;  %2593 = vmatmul.mubr.msk.bf16.gmra.mxu0 %vm481_vm2, %v3075_v31  ;;  %v3157_v29 = vld [vmem:[#allocation2 + $0x2d0] ss:$12 sps:$4 sm:$0xff]  }
  0x65   :  { %400 = vmatprep.mubr.bf16.mxu1 %v3308_v3  ;;  %558 = vmatprep.mubr.bf16.mxu0 %v3308_v3 }
  0x66   :  { %1576 = vmatpush1.bf16.msra.mxu0 %v3088_v39  ;;  %v3177_v39 = vld [vmem:[#allocation2 + $0x244] ss:$12 sps:$4 sm:$0xff]  }
  0x67   :  { %1577 = vmatprep.subr.bf16.mxu0 %v3093_v40  ;;  %v3175_v40 = vld [vmem:[#allocation2 + $0x240] ss:$12 sps:$4 sm:$0xff]  }
  0x6a   :  { %1578 = vmatpush1.bf16.msra.mxu0 %v3091_v41  ;;  %v3178_v41 = vld [vmem:[#allocation2 + $0x170] ss:$12 sps:$4 sm:$0xff]  }
  0x6b   :  { %1579 = vmatprep.subr.bf16.mxu0 %v3096_v43 }
  0x6c   :  { %2578 = vmatmul.mubr.msk.bf16.gmra.mxu1 %vm157_vm1, %v3061_v17  ;;  %2594 = vmatmul.mubr.msk.bf16.gmra.mxu0 %vm481_vm2, %v3076_v32  ;;  %v3139_v17 = vld [vmem:[#allocation2 + $0x1b0] ss:$12 sps:$4 sm:$0xff]  }
  0x6d   :  { %410 = vmatprep.mubr.bf16.mxu1 %v3308_v3  ;;  %568 = vmatprep.mubr.bf16.mxu0 %v3308_v3 }
  0x6e   :  { %1580 = vmatpush1.bf16.msra.mxu0 %v3094_v44 }
  0x6f   :  { %1581 = vmatprep.subr.bf16.mxu0 %v3099_v45 }
  0x72   :  { %1582 = vmatpush1.bf16.msra.mxu0 %v3097_v46 }
  0x73   :  { %1583 = vmatprep.subr.bf16.mxu0 %v3102_v48 }
  0x74   :  { %2579 = vmatmul.mubr.msk.bf16.gmra.mxu1 %vm157_vm1, %v3063_v24  ;;  %2595 = vmatmul.mubr.msk.bf16.gmra.mxu0 %vm481_vm2, %v3474_v35  ;;  %v3148_v24 = vld [vmem:[#allocation2 + $0xc0] ss:$12 sps:$4 sm:$0xff]  }
  0x75   :  { %578 = vmatprep.mubr.bf16.mxu0 %v3308_v3  ;;  %651 = vmatprep.mubr.bf16.mxu1 %v3308_v3 }
  0x76   :  { %1584 = vmatpush1.bf16.msra.mxu0 %v3100_v49 }
  0x77   :  { %1585 = vmatprep.subr.bf16.mxu0 %v3105_v50 }
  0x7a   :  { %1586 = vmatpush1.bf16.msra.mxu0 %v3103_v51 }
  0x7b   :  { %1587 = vmatprep.subr.bf16.mxu0 %v3108_v53 }
  0x7c   :  { %2596 = vmatmul.mubr.msk.bf16.gmra.mxu0 %vm481_vm2, %v3484_v42  ;;  %2600 = vmatmul.mubr.msk.bf16.vlgmr.msra.gmra.mxu1 %vm481_vm2, %v3074_v30  ;;  %v3162_v30 = vld [vmem:[#allocation2 + $0x2bc] ss:$12 sps:$4 sm:$0xff]  }
  0x7d   :  { %588 = vmatprep.mubr.bf16.mxu0 %v3308_v3  ;;  %661 = vmatprep.mubr.bf16.mxu1 %v3308_v3 }
  0x7e   :  { %1588 = vmatpush2.bf16.msra.mxu0 %v3106_v55  ;;  %1685 = vmatpush1.bf16.msra.mxu1 %v3109_v56 }
  0x7f   :  { %1589 = vmatprep.subr.bf16.mxu0 %v3114_v57  ;;  %1686 = vmatprep.subr.bf16.mxu1 %v3117_v58 }
  0x82   :  { %1590 = vmatpush2.bf16.msra.mxu0 %v3112_v59  ;;  %1687 = vmatpush1.bf16.msra.mxu1 %v3115_v60 }
  0x83   :  { %1591 = vmatprep.subr.bf16.mxu0 %v3120_v62  ;;  %1688 = vmatprep.subr.bf16.mxu1 %v3123_v63 }
  0x84   :  { %2597 = vmatmul.mubr.msk.bf16.gmra.mxu0 %vm481_vm2, %v3494_v47  ;;  %2601 = vmatmul.mubr.msk.bf16.gmra.mxu1 %vm481_vm2, %v3075_v31  ;;  %v3160_v31 = vld [vmem:[#allocation2 + $0x2b8] ss:$12 sps:$4 sm:$0xff]  }
  0x85   :  { %598 = vmatprep.mubr.bf16.mxu0 %v3308_v3  ;;  %671 = vmatprep.mubr.bf16.mxu1 %v3308_v3 }
  0x86   :  { %1592 = vmatpush2.bf16.msra.mxu0 %v3118_v0  ;;  %1689 = vmatpush1.bf16.msra.mxu1 %v3121_v1 }
  0x87   :  { %1593 = vmatprep.subr.bf16.mxu0 %v3126_v2  ;;  %1690 = vmatprep.subr.bf16.mxu1 %v3129_v5 }
  0x8a   :  { %1594 = vmatpush2.bf16.msra.mxu0 %v3124_v6  ;;  %1691 = vmatpush1.bf16.msra.mxu1 %v3127_v7 }
  0x8b   :  { %1595 = vmatprep.subr.bf16.mxu0 %v3132_v8  ;;  %1692 = vmatprep.subr.bf16.mxu1 %v3135_v9 }
  0x8c   :  { %2598 = vmatmul.mubr.msk.bf16.gmra.mxu0 %vm481_vm2, %v3504_v52  ;;  %2602 = vmatmul.mubr.msk.bf16.gmra.mxu1 %vm481_vm2, %v3076_v32  ;;  %v3165_v32 = vld [vmem:[#allocation2 + $0x2a4] ss:$12 sps:$4 sm:$0xff]  }
  0x8d   :  { %608 = vmatprep.mubr.bf16.mxu0 %v3308_v3  ;;  %681 = vmatprep.mubr.bf16.mxu1 %v3308_v3 }
  0x8e   :  { %1596 = vmatpush2.bf16.msra.mxu0 %v3130_v11  ;;  %1693 = vmatpush1.bf16.msra.mxu1 %v3133_v12 }
  0x8f   :  { %1597 = vmatprep.subr.bf16.mxu0 %v3138_v13  ;;  %1694 = vmatprep.subr.bf16.mxu1 %v3141_v15 }
  0x92   :  { %1598 = vmatpush2.bf16.msra.mxu0 %v3136_v16  ;;  %1695 = vmatpush1.bf16.msra.mxu1 %v3139_v17 }
  0x93   :  { %1599 = vmatprep.subr.bf16.mxu0 %v3144_v18  ;;  %1696 = vmatprep.subr.bf16.mxu1 %v3147_v19 }
  0x94   :  { %2599 = vmatmul.mubr.msk.bf16.gmra.mxu0 %vm481_vm2, %v3514_v61  ;;  %2603 = vmatmul.mubr.msk.bf16.gmra.mxu1 %vm481_vm2, %v3474_v35  ;;  %v3166_v35 = vld [vmem:[#allocation2 + $0x288] ss:$12 sps:$4 sm:$0xff]  }
  0x95   :  { %691 = vmatprep.mubr.bf16.mxu1 %v3308_v3 }
  0x96   :  { %1600 = vmatpush2.bf16.msra.mxu0 %v3142_v20  ;;  %1697 = vmatpush1.bf16.msra.mxu1 %v3145_v21 }
  0x97   :  { %1601 = vmatprep.subr.bf16.mxu0 %v3150_v22  ;;  %1698 = vmatprep.subr.bf16.mxu1 %v3153_v23 }
  0x9a   :  { %1602 = vmatpush2.bf16.msra.mxu0 %v3148_v24  ;;  %1699 = vmatpush1.bf16.msra.mxu1 %v3151_v25 }
  0x9b   :  { %1700 = vmatprep.subr.bf16.mxu1 %v3156_v26  ;;  %2808 = vmatprep.subr.bf16.mxu0 %v3178_v41 }
  0x9c   :  { %2604 = vmatmul.mubr.msk.bf16.gmra.mxu1 %vm481_vm2, %v3484_v42  ;;  %v3180_v42 = vld [vmem:[#allocation2 + $0x2f0] ss:$12 sps:$4 sm:$0xff]  }
  0x9d   :  { %701 = vmatprep.mubr.bf16.mxu1 %v3308_v3 }
  0x9e   :  { %1701 = vmatpush2.bf16.msra.mxu1 %v3154_v27 }
  0x9f   :  { %1702 = vmatprep.subr.bf16.mxu1 %v3159_v28 }
  0xa2   :  { %1703 = vmatpush2.bf16.msra.mxu1 %v3157_v29 }
  0xa3   :  { %1704 = vmatprep.subr.bf16.mxu1 %v3162_v30 }
  0xa4   :  { %2605 = vmatmul.mubr.msk.bf16.gmra.mxu1 %vm481_vm2, %v3494_v47 }
  0xa5   :  { %711 = vmatprep.mubr.bf16.mxu1 %v3308_v3 }
  0xa6   :  { %1705 = vmatpush2.bf16.msra.mxu1 %v3160_v31  ;;  %v4143_v31 = vsub.s32 1, %v3371_v4 }
  0xa7   :  { %1706 = vmatprep.subr.bf16.mxu1 %v3165_v32  ;;  %v4144_v32 = vsub.s32 0, %v3371_v4 }
  0xaa   :  { %1707 = vmatpush2.bf16.msra.mxu1 %v3163_v33 }
  0xab   :  { %1708 = vmatprep.subr.bf16.mxu1 %v3168_v34 }
  0xac   :  { %2606 = vmatmul.mubr.msk.bf16.gmra.mxu1 %vm481_vm2, %v3504_v52 }
  0xad   :  { %721 = vmatprep.mubr.bf16.mxu1 %v3308_v3  ;;  %v3171_v3 = vld [vmem:[#allocation2 + $0x274] ss:$12 sps:$4 sm:$0xff]  }
  0xae   :  { %1709 = vmatpush2.bf16.msra.mxu1 %v3166_v35  ;;  %v3627_v35 = vld [vmem:[%s4135_s4] sm:$0xf] }
  0xaf   :  { %1710 = vmatprep.subr.bf16.mxu1 %v3171_v3 }
  0xb2   :  { %1711 = vmatpush2.bf16.msra.mxu1 %v3169_v36 }
  0xb3   :  { %1712 = vmatprep.subr.bf16.mxu1 %v3174_v37  ;;  %v3634_v37 = vrot.slane %v3627_v35, %v4143_v31 }
  0xb4   :  { %2607 = vmatmul.mubr.msk.bf16.gmra.mxu1 %vm481_vm2, %v3514_v61 }
  0xb6   :  { %1713 = vmatpush2.bf16.msra.mxu1 %v3172_v38 }
  0xb7   :  { %1714 = vmatprep.subr.bf16.mxu1 %v3177_v39  ;;  %v3639_v39 = vrot.slane %v3627_v35, %v4144_v32 }
  0xba   :  { %1715 = vmatpush2.bf16.msra.mxu1 %v3175_v40 }
  0xbb   :  { %2872 = vmatprep.subr.bf16.mxu1 %v3180_v42 }
  0xec   :  { %v229_v43 = vpop.f32.mrf.mxu0  ;;  %v3532_v44 = vpop.f32.mrf.mxu1 }
  0xee   :  { %v231_v45 = vpop.f32.mrf.mxu0  ;;  %v3534_v46 = vpop.f32.mrf.mxu1 }
  0xf0   :  { %v233_v47 = vpop.f32.mrf.mxu0  ;;  %v3536_v48 = vpop.f32.mrf.mxu1 }
  0xf2   :  { %v235_v49 = vpop.f32.mrf.mxu0  ;;  %v3538_v50 = vpop.f32.mrf.mxu1 }
  0xf4   :  { %v3540_v51 = vpop.f32.mrf.mxu0  ;;  %v3542_v52 = vpop.f32.mrf.mxu1 }
  0xf6   :  { %v3544_v53 = vpop.f32.mrf.mxu0  ;;  %v3546_v54 = vpop.f32.mrf.mxu1 }
  0xf8   :  { %v3548_v55 = vpop.f32.mrf.mxu0  ;;  %v3550_v56 = vpop.f32.mrf.mxu1 }
  0xfa   :  { %v3552_v57 = vpop.f32.mrf.mxu0  ;;  %v3554_v58 = vpop.f32.mrf.mxu1 }
  0xfb   :  { %4151 = vst [vmem:[#allocation13_spill] sm:$0xff] %v3554_v58 }
  0xfc   :  { %v3556_v59 = vpop.f32.mrf.mxu0  ;;  %v3558_v60 = vpop.f32.mrf.mxu1 }
  0xfe   :  { %v3560_v61 = vpop.f32.mrf.mxu0  ;;  %v3562_v62 = vpop.f32.mrf.mxu1 }
 0x100   :  { %v3564_v63 = vpop.f32.mrf.mxu0  ;;  %v3566_v0 = vpop.f32.mrf.mxu1 }
 0x102   :  { %v3568_v1 = vpop.f32.mrf.mxu0  ;;  %v3570_v2 = vpop.f32.mrf.mxu1 }
 0x104   :  { %v3572_v5 = vpop.f32.mrf.mxu0  ;;  %v3574_v6 = vpop.f32.mrf.mxu1 }
 0x106   :  { %v3576_v7 = vpop.f32.mrf.mxu0  ;;  %v3578_v8 = vpop.f32.mrf.mxu1 }
 0x108   :  { %v3580_v9 = vpop.f32.mrf.mxu0  ;;  %v3582_v11 = vpop.f32.mrf.mxu1 }
 0x10a   :  { %v3584_v12 = vpop.f32.mrf.mxu0  ;;  %v3586_v13 = vpop.f32.mrf.mxu1 }
 0x10c   :  { %v3588_v15 = vpop.f32.mrf.mxu0  ;;  %v3590_v16 = vpop.f32.mrf.mxu1 }
 0x10e   :  { %v3592_v17 = vpop.f32.mrf.mxu0  ;;  %v3594_v18 = vpop.f32.mrf.mxu1 }
 0x110   :  { %v3596_v19 = vpop.f32.mrf.mxu0  ;;  %v3598_v20 = vpop.f32.mrf.mxu1 }
 0x112   :  { %v3600_v21 = vpop.f32.mrf.mxu0  ;;  %v3602_v22 = vpop.f32.mrf.mxu1 }
 0x114   :  { %v3604_v23 = vpop.f32.mrf.mxu0  ;;  %v3606_v24 = vpop.f32.mrf.mxu1 }
 0x116   :  { %v3608_v25 = vpop.f32.mrf.mxu0  ;;  %v3610_v26 = vpop.f32.mrf.mxu1 }
 0x118   :  { %v3612_v27 = vpop.f32.mrf.mxu0  ;;  %v3614_v28 = vpop.f32.mrf.mxu1 }
 0x119   :  { %4152 = vst [vmem:[#allocation14_spill] sm:$0xff] %v3614_v28 }
 0x11a   :  { %v3616_v29 = vpop.f32.mrf.mxu0  ;;  %v3618_v30 = vpop.f32.mrf.mxu1 }
 0x11b   :  { %4153 = vst [vmem:[#allocation15_spill] sm:$0xff] %v3618_v30 }
 0x11c   :  { %v3622_v33 = vpop.f32.mrf.mxu1  ;;  %v540_v34 = vpop.f32.mrf.mxu0 }
 0x11d   :  { %4154 = vst [vmem:[#allocation16_spill] sm:$0xff] %v3622_v33  ;;  %v541_v40 = vadd.f32 %v540_v34, %v229_v43 }
 0x11e   :  { %v3629_v3 = vpop.f32.mrf.mxu1  ;;  %v542_v36 = vpop.f32.mrf.mxu0 }
 0x11f   :  { %4155 = vst [vmem:[#allocation17_spill] sm:$0xff] %v3629_v3  ;;  %v543_v38 = vadd.f32 %v542_v36, %v231_v45  ;;  %v754_v45 = vadd.f32 %v3639_v39, %v541_v40 }
 0x120   :  { %v3641_v41 = vpop.f32.mrf.mxu1  ;;  %v544_v42 = vpop.f32.mrf.mxu0 }
 0x121   :  { %4156 = vst [vmem:[#allocation18_spill] sm:$0xff] %v3641_v41  ;;  %v545_v10 = vadd.f32 %v544_v42, %v233_v47  ;;  %v755_v33 = vadd.f32 %v3634_v37, %v543_v38  ;;  %v818_v28 = vmax.f32 %v754_v45, 0.0  ;;  %v3183_v45 = vld [vmem:[#allocation2 + $0x98] ss:$12 sps:$4 sm:$0xff]  }
 0x122   :  { %v3643_v14 = vpop.f32.mrf.mxu1  ;;  %v546_v3 = vpop.f32.mrf.mxu0 }
 0x123   :  { %4157 = vst [vmem:[#allocation19_spill] sm:$0xff] %v3643_v14  ;;  %v758_v30 = vadd.f32 %v3639_v39, %v545_v10  ;;  %v547_v31 = vadd.f32 %v546_v3, %v235_v49  ;;  %v819_v47 = vmax.f32 %v755_v33, 0.0  ;;  %v3182_v33 = vld [vmem:[#allocation2 + $0x158] ss:$12 sps:$4 sm:$0xff]  }
 0x124   :  { %v3648_v36 = vpop.f32.mrf.mxu1  ;;  %v550_v58 = vpop.f32.mrf.mxu0 }
 0x125   :  { %4158 = vst [vmem:[#allocation20_spill] sm:$0xff] %v3648_v36  ;;  %v759_v32 = vadd.f32 %v3634_v37, %v547_v31  ;;  %v822_v43 = vmax.f32 %v758_v30, 0.0  ;;  %v551_v38 = vadd.f32 %v550_v58, %v3540_v51  ;;  %v3179_v36 = vld [vmem:[#allocation2 + $0xb0] ss:$12 sps:$4 sm:$0xff]  }
 0x126   :  { %v3651_v34 = vpop.f32.mrf.mxu1  ;;  %v552_v41 = vpop.f32.mrf.mxu0 }
 0x127   :  { %4159 = vst [vmem:[#allocation21_spill] sm:$0xff] %v3651_v34  ;;  %v823_v42 = vmax.f32 %v759_v32, 0.0  ;;  %v553_v14 = vadd.f32 %v552_v41, %v3544_v53  ;;  %v3660_v31 = vpack.c.bf16 %v822_v43, %v818_v28  ;;  %v762_v58 = vadd.f32 %v3639_v39, %v551_v38 }
 0x128   :  { %v3655_v10 = vpop.f32.mrf.mxu1  ;;  %v554_v49 = vpop.f32.mrf.mxu0 }
 0x129   :  { %v555_v3 = vadd.f32 %v554_v49, %v3548_v55  ;;  %v3658_v40 = vpack.c.bf16 %v823_v42, %v819_v47  ;;  %4160 = vst [vmem:[#allocation22_spill] sm:$0xff] %v3660_v31  ;;  %v763_v32 = vadd.f32 %v3634_v37, %v553_v14  ;;  %v3184_v42 = vld [vmem:[#allocation2 + $0x140] ss:$12 sps:$4 sm:$0xff]   ;;  %v826_v38 = vmax.f32 %v762_v58, 0.0 }
 0x12a   :  { %v3662_v30 = vpop.f32.mrf.mxu1  ;;  %v556_v34 = vpop.f32.mrf.mxu0 }
 0x12b   :  { %4161 = vst [vmem:[#allocation23_spill] sm:$0xff] %v3662_v30  ;;  %v766_v53 = vadd.f32 %v3639_v39, %v555_v3  ;;  %v557_v51 = vadd.f32 %v556_v34, %v3552_v57  ;;  %1603 = vmatprep.mubr.bf16.mxu0 %v3658_v40  ;;  %v827_v57 = vmax.f32 %v763_v32, 0.0  ;;  %v3188_v32 = vld [vmem:[#allocation2 + $0x128] ss:$12 sps:$4 sm:$0xff]  }
 0x12c   :  { %v3669_v55 = vpop.f32.mrf.mxu1  ;;  %v560_v41 = vpop.f32.mrf.mxu0  ;;  %1604 = vmatmul.mubr.bf16.vlgmr.msra.gmra.mxu0 %v3660_v31 }
 0x12d   :  { %4162 = vst [vmem:[#allocation24_spill] sm:$0xff] %v3669_v55  ;;  %v767_v28 = vadd.f32 %v3634_v37, %v557_v51  ;;  %2809 = vmatpush3.bf16.msra.mxu0 %v3179_v36  ;;  %v830_v43 = vmax.f32 %v766_v53, 0.0  ;;  %v561_v3 = vadd.f32 %v560_v41, %v3556_v59  ;;  %v3186_v53 = vld [vmem:[#allocation2 + $0x80] ss:$12 sps:$4 sm:$0xff]  }
 0x12e   :  { %v3673_v47 = vpop.f32.mrf.mxu1  ;;  %v562_v14 = vpop.f32.mrf.mxu0  ;;  %2810 = vmatprep.subr.bf16.mxu0 %v3182_v33 }
 0x12f   :  { %4163 = vst [vmem:[#allocation25_spill] sm:$0xff] %v3673_v47  ;;  %v831_v34 = vmax.f32 %v767_v28, 0.0  ;;  %v563_v49 = vadd.f32 %v562_v14, %v3560_v61  ;;  %v3684_v30 = vpack.c.bf16 %v830_v43, %v826_v38 }
 0x130   :  { %v3677_v55 = vpop.f32.mrf.mxu1  ;;  %v564_v31 = vpop.f32.mrf.mxu0 }
 0x131   :  { %v565_v51 = vadd.f32 %v564_v31, %v3564_v63  ;;  %v3680_v36 = vpack.c.bf16 %v831_v34, %v827_v57  ;;  %2811 = vmatpush3.bf16.msra.mxu0 %v3183_v45  ;;  %v771_v61 = vadd.f32 %v3634_v37, %v563_v49  ;;  %v770_v63 = vadd.f32 %v3639_v39, %v561_v3  ;;  %v3189_v45 = vld [vmem:[#allocation2 + $0x68] ss:$12 sps:$4 sm:$0xff]   ;;  %v3190_v57 = vld [vmem:[#allocation2 + $0x110] ss:$12 sps:$4 sm:$0xff]  }
 0x132   :  { %v3682_v47 = vpop.f32.mrf.mxu1  ;;  %v566_v33 = vpop.f32.mrf.mxu0  ;;  %2812 = vmatprep.subr.bf16.mxu0 %v3184_v42 }
 0x133   :  { %v774_v59 = vadd.f32 %v3639_v39, %v565_v51  ;;  %v567_v58 = vadd.f32 %v566_v33, %v3568_v1  ;;  %1613 = vmatprep.mubr.bf16.mxu0 %v3680_v36  ;;  %v835_v1 = vmax.f32 %v771_v61, 0.0  ;;  %v834_v49 = vmax.f32 %v770_v63, 0.0 }
 0x134   :  { %v3691_v31 = vpop.f32.mrf.mxu1  ;;  %v570_v41 = vpop.f32.mrf.mxu0  ;;  %1614 = vmatmul.mubr.bf16.gmra.mxu0 %v3684_v30  ;;  %v4167_v63 = vsub.s32 2, %v3371_v4 }
 0x135   :  { %v775_v28 = vadd.f32 %v3634_v37, %v567_v58  ;;  %2813 = vmatpush3.bf16.msra.mxu0 %v3186_v53  ;;  %v838_v43 = vmax.f32 %v774_v59, 0.0  ;;  %v571_v33 = vadd.f32 %v570_v41, %v3572_v5  ;;  %v3192_v59 = vld [vmem:[#allocation2 + $0x50] ss:$12 sps:$4 sm:$0xff]  }
 0x136   :  { %v3695_v14 = vpop.f32.mrf.mxu1  ;;  %v572_v42 = vpop.f32.mrf.mxu0  ;;  %2814 = vmatprep.subr.bf16.mxu0 %v3188_v32 }
 0x137   :  { %4164 = vst [vmem:[#allocation26_spill] sm:$0xff] %v3695_v14  ;;  %v839_v34 = vmax.f32 %v775_v28, 0.0  ;;  %v573_v38 = vadd.f32 %v572_v42, %v3576_v7  ;;  %v748_v14 = vsub.s32 3, %v3371_v4  ;;  %v3707_v28 = vpack.c.bf16 %v838_v43, %v834_v49  ;;  %v3194_v7 = vld [vmem:[#allocation2 + $0xf8] ss:$12 sps:$4 sm:$0xff]  }
 0x138   :  { %v3698_v3 = vpop.f32.mrf.mxu1  ;;  %v574_v51 = vpop.f32.mrf.mxu0  ;;  %v3712_v42 = vrot.slane %v3627_v35, %v4167_v63  ;;  %v778_v43 = vadd.f32 %v3639_v39, %v571_v33  ;;  %v3195_v49 = vld [vmem:[#allocation2 + $0x38] ss:$12 sps:$4 sm:$0xff]  }
 0x139   :  { %v575_v58 = vadd.f32 %v574_v51, %v3580_v9  ;;  %v3702_v53 = vpack.c.bf16 %v839_v34, %v835_v1  ;;  %2815 = vmatpush3.bf16.msra.mxu0 %v3189_v45  ;;  %4166 = vst [vmem:[#allocation28_spill] sm:$0xff] %v3707_v28  ;;  %v779_v41 = vadd.f32 %v3634_v37, %v573_v38 }
 0x13a   :  { %v3705_v32 = vpop.f32.mrf.mxu1  ;;  %v576_v61 = vpop.f32.mrf.mxu0  ;;  %2816 = vmatprep.subr.bf16.mxu0 %v3190_v57  ;;  %v3723_v51 = vrot.slane %v3627_v35, %v748_v14 }
 0x13b   :  { %4165 = vst [vmem:[#allocation27_spill] sm:$0xff] %v3705_v32  ;;  %v782_v5 = vadd.f32 %v3639_v39, %v575_v58  ;;  %v577_v9 = vadd.f32 %v576_v61, %v3584_v12  ;;  %1623 = vmatprep.mubr.bf16.mxu0 %v3702_v53  ;;  %v3196_v61 = vld [vmem:[#allocation2 + $0xe0] ss:$12 sps:$4 sm:$0xff]   ;;  %v843_v33 = vmax.f32 %v779_v41, 0.0 }
 0x13c   :  { %v580_v45 = vpop.f32.mrf.mxu0  ;;  %v653_v1 = vpop.f32.mrf.mxu1  ;;  %1624 = vmatmul.mubr.bf16.gmra.mxu0 %v3707_v28 }
 0x13d   :  { %v783_v57 = vadd.f32 %v3634_v37, %v577_v9  ;;  %v654_v34 = vadd.f32 %v653_v1, %v3558_v60  ;;  %2817 = vmatpush3.bf16.msra.mxu0 %v3192_v59  ;;  %v846_v38 = vmax.f32 %v782_v5, 0.0  ;;  %v842_v59 = vmax.f32 %v778_v43, 0.0 }
 0x13e   :  { %v582_v12 = vpop.f32.mrf.mxu0  ;;  %v655_v58 = vpop.f32.mrf.mxu1  ;;  %2818 = vmatprep.subr.bf16.mxu0 %v3194_v7  ;;  %v581_v1 = vadd.f32 %v580_v45, %v3588_v15 }
 0x13f   :  { %v847_v63 = vmax.f32 %v783_v57, 0.0  ;;  %v756_v4 = vadd.f32 %v3712_v42, %v654_v34  ;;  %v583_v28 = vadd.f32 %v582_v12, %v3592_v17  ;;  %v656_v9 = vadd.f32 %v655_v58, %v3562_v62  ;;  %v3198_v62 = vld [vmem:[#allocation2 + $0x20] ss:$12 sps:$4 sm:$0xff]  }
 0x140   :  { %v584_v32 = vpop.f32.mrf.mxu0  ;;  %v657_v60 = vpop.f32.mrf.mxu1 }
 0x141   :  { %v585_v35 = vadd.f32 %v584_v32, %v3596_v19  ;;  %2819 = vmatpush3.bf16.msra.mxu0 %v3195_v49  ;;  %v787_v14 = vadd.f32 %v3634_v37, %v583_v28  ;;  %v757_v7 = vadd.f32 %v3723_v51, %v656_v9  ;;  %v658_v5 = vadd.f32 %v657_v60, %v3566_v0  ;;  %v3200_v32 = vld [vmem:[#allocation2 + $0xc8] ss:$12 sps:$4 sm:$0xff]  }
 0x142   :  { %v586_v57 = vpop.f32.mrf.mxu0  ;;  %v659_v34 = vpop.f32.mrf.mxu1  ;;  %v3733_v17 = vpack.c.bf16 %v847_v63, %v843_v33  ;;  %2820 = vmatprep.subr.bf16.mxu0 %v3196_v61  ;;  %v3738_v19 = vpack.c.bf16 %v846_v38, %v842_v59  ;;  %v786_v49 = vadd.f32 %v3639_v39, %v581_v1  ;;  %v3201_v9 = vld [vmem:[#allocation2 + $0x8] ss:$12 sps:$4 sm:$0xff]  }
 0x143   :  { %v790_v41 = vadd.f32 %v3639_v39, %v585_v35  ;;  %v587_v43 = vadd.f32 %v586_v57, %v3600_v21  ;;  %v660_v15 = vadd.f32 %v659_v34, %v3570_v2  ;;  %v760_v28 = vadd.f32 %v3712_v42, %v658_v5 }
 0x144   :  { %1633 = vmatprep.mubr.bf16.mxu0 %v3733_v17  ;;  %v590_v0 = vpop.f32.mrf.mxu0  ;;  %v663_v45 = vpop.f32.mrf.mxu1  ;;  %v820_v21 = vmax.f32 %v756_v4, 0.0  ;;  %v851_v61 = vmax.f32 %v787_v14, 0.0  ;;  %v821_v5 = vmax.f32 %v757_v7, 0.0 }
 0x145   :  { %v791_v12 = vadd.f32 %v3634_v37, %v587_v43  ;;  %v761_v58 = vadd.f32 %v3723_v51, %v660_v15  ;;  %1634 = vmatmul.mubr.bf16.gmra.mxu0 %v3738_v19  ;;  %v824_v2 = vmax.f32 %v760_v28, 0.0  ;;  %v664_v38 = vadd.f32 %v663_v45, %v3574_v6 }
 0x146   :  { %v592_v63 = vpop.f32.mrf.mxu0  ;;  %v665_v33 = vpop.f32.mrf.mxu1  ;;  %2821 = vmatpush3.bf16.msra.mxu0 %v3198_v62  ;;  %v854_v60 = vmax.f32 %v790_v41, 0.0  ;;  %v850_v6 = vmax.f32 %v786_v49, 0.0  ;;  %v591_v15 = vadd.f32 %v590_v0, %v3604_v23 }
 0x147   :  { %v855_v59 = vmax.f32 %v791_v12, 0.0  ;;  %v825_v35 = vmax.f32 %v761_v58, 0.0  ;;  %v593_v1 = vadd.f32 %v592_v63, %v3608_v25  ;;  %2822 = vmatprep.subr.bf16.mxu0 %v3200_v32  ;;  %v3748_v57 = vpack.c.bf16 %v824_v2, %v820_v21 }
 0x148   :  { %v764_v34 = vadd.f32 %v3712_v42, %v664_v38  ;;  %v666_v4 = vadd.f32 %v665_v33, %v3578_v8  ;;  %v594_v14 = vpop.f32.mrf.mxu0  ;;  %v667_v43 = vpop.f32.mrf.mxu1  ;;  %v3181_v8 = vld [vmem:[#allocation2 + $0x230] ss:$12 sps:$4 sm:$0xff]   ;;  %v3764_v0 = vpack.c.bf16 %v854_v60, %v850_v6  ;;  %v794_v2 = vadd.f32 %v3639_v39, %v591_v15 }
 0x149   :  { %v595_v62 = vadd.f32 %v594_v14, %v3612_v27  ;;  %v668_v41 = vadd.f32 %v667_v43, %v3582_v11  ;;  %v795_v28 = vadd.f32 %v3634_v37, %v593_v1  ;;  %v3757_v45 = vpack.c.bf16 %v855_v59, %v851_v61  ;;  %v3185_v11 = vld [vmem:[#allocation2 + $0x2d8] ss:$12 sps:$4 sm:$0xff]   ;;  %v3191_v43 = vld [vmem:[#allocation2 + $0x2c0] ss:$12 sps:$4 sm:$0xff]  }
 0x14a   :  { %v765_v25 = vadd.f32 %v3723_v51, %v666_v4  ;;  %v596_v7 = vpop.f32.mrf.mxu0  ;;  %v669_v32 = vpop.f32.mrf.mxu1  ;;  %v3759_v12 = vpack.c.bf16 %v825_v35, %v821_v5  ;;  %2823 = vmatpush3.bf16.msra.mxu0 %v3201_v9  ;;  %v3187_v35 = vld [vmem:[#allocation2 + $0x218] ss:$12 sps:$4 sm:$0xff]  }
 0x14b   :  { %v798_v49 = vadd.f32 %v3639_v39, %v595_v62  ;;  %v768_v23 = vadd.f32 %v3712_v42, %v668_v41  ;;  %v597_v27 = vadd.f32 %v596_v7, %v3616_v29  ;;  %v670_v58 = vadd.f32 %v669_v32, %v3586_v13  ;;  %1643 = vmatprep.mubr.bf16.mxu0 %v3757_v45 }
 0x14c   :  { %1716 = vmatprep.mubr.bf16.mxu1 %v3759_v12  ;;  %v600_v21 = vpop.f32.mrf.mxu0  ;;  %v673_v61 = vpop.f32.mrf.mxu1  ;;  %v828_v29 = vmax.f32 %v764_v34, 0.0  ;;  %v859_v33 = vmax.f32 %v795_v28, 0.0  ;;  %v829_v6 = vmax.f32 %v765_v25, 0.0 }
 0x14d   :  { %v832_v38 = vmax.f32 %v768_v23, 0.0  ;;  %v799_v63 = vadd.f32 %v3634_v37, %v597_v27  ;;  %1644 = vmatmul.mubr.bf16.gmra.mxu0 %v3764_v0  ;;  %1717 = vmatmul.mubr.bf16.vlgmr.msra.gmra.mxu1 %v3748_v57  ;;  %v769_v9 = vadd.f32 %v3723_v51, %v670_v58  ;;  %v674_v13 = vadd.f32 %v673_v61, %v3590_v16 }
 0x14e   :  { %2873 = vmatpush3.bf16.msra.mxu1 %v3181_v8  ;;  %v602_v60 = vpop.f32.mrf.mxu0  ;;  %v675_v59 = vpop.f32.mrf.mxu1  ;;  %v862_v1 = vmax.f32 %v798_v49, 0.0  ;;  %v858_v16 = vmax.f32 %v794_v2, 0.0  ;;  %v601_v7 = vadd.f32 %v600_v21, %v3532_v44 }
 0x14f   :  { %v863_v5 = vmax.f32 %v799_v63, 0.0  ;;  %v603_v4 = vadd.f32 %v602_v60, %v3534_v46  ;;  %v676_v14 = vadd.f32 %v675_v59, %v3594_v18  ;;  %2874 = vmatprep.subr.bf16.mxu1 %v3185_v11  ;;  %v833_v15 = vmax.f32 %v769_v9, 0.0  ;;  %v3193_v11 = vld [vmem:[#allocation2 + $0x200] ss:$12 sps:$4 sm:$0xff]  }
 0x150   :  { %v772_v34 = vadd.f32 %v3712_v42, %v674_v13  ;;  %v604_v62 = vpop.f32.mrf.mxu0  ;;  %v677_v41 = vpop.f32.mrf.mxu1  ;;  %v3778_v28 = vpack.c.bf16 %v832_v38, %v828_v29  ;;  %v3791_v21 = vpack.c.bf16 %v862_v1, %v858_v16  ;;  %v802_v63 = vadd.f32 %v3639_v39, %v601_v7  ;;  %v3199_v1 = vld [vmem:[#allocation2 + $0x1e8] ss:$12 sps:$4 sm:$0xff]  }
 0x151   :  { %v773_v32 = vadd.f32 %v3723_v51, %v676_v14  ;;  %v605_v8 = vadd.f32 %v604_v62, %v3536_v48  ;;  %v803_v46 = vadd.f32 %v3634_v37, %v603_v4  ;;  %v678_v18 = vadd.f32 %v677_v41, %v3598_v20  ;;  %v3197_v48 = vld [vmem:[#allocation2 + $0x2a8] ss:$12 sps:$4 sm:$0xff]  }
 0x152   :  { %v606_v49 = vpop.f32.mrf.mxu0  ;;  %v679_v25 = vpop.f32.mrf.mxu1  ;;  %v3785_v23 = vpack.c.bf16 %v863_v5, %v859_v33  ;;  %v3787_v27 = vpack.c.bf16 %v833_v15, %v829_v6  ;;  %2875 = vmatpush3.bf16.msra.mxu1 %v3187_v35  ;;  %v836_v29 = vmax.f32 %v772_v34, 0.0  ;;  %v866_v7 = vmax.f32 %v802_v63, 0.0 }
 0x153   :  { %v806_v58 = vadd.f32 %v3639_v39, %v605_v8  ;;  %v607_v44 = vadd.f32 %v606_v49, %v3538_v50  ;;  %2876 = vmatprep.subr.bf16.mxu1 %v3191_v43  ;;  %v776_v61 = vadd.f32 %v3712_v42, %v678_v18  ;;  %v680_v20 = vadd.f32 %v679_v25, %v3602_v22  ;;  %v4168_v18 = vld [vmem:[#allocation14_spill] sm:$0xff] }
 0x154   :  { %1653 = vmatprep.mubr.bf16.mxu0 %v3785_v23  ;;  %1726 = vmatprep.mubr.bf16.mxu1 %v3787_v27  ;;  %v610_v2 = vpop.f32.mrf.mxu0  ;;  %v683_v38 = vpop.f32.mrf.mxu1  ;;  %v867_v9 = vmax.f32 %v803_v46, 0.0  ;;  %v837_v13 = vmax.f32 %v773_v32, 0.0 }
 0x155   :  { %v807_v33 = vadd.f32 %v3634_v37, %v607_v44  ;;  %v684_v50 = vadd.f32 %v683_v38, %v3606_v24  ;;  %1654 = vmatmul.mubr.bf16.gmra.mxu0 %v3791_v21  ;;  %1727 = vmatmul.mubr.bf16.gmra.mxu1 %v3778_v28  ;;  %v840_v22 = vmax.f32 %v776_v61, 0.0  ;;  %v777_v60 = vadd.f32 %v3723_v51, %v680_v20  ;;  %v3202_v24 = vld [vmem:[#allocation2 + $0x290] ss:$12 sps:$4 sm:$0xff]   ;;  %v4170_v61 = vld [vmem:[#allocation15_spill] sm:$0xff] }
 0x156   :  { %v612_v59 = vpop.f32.mrf.mxu0  ;;  %v685_v35 = vpop.f32.mrf.mxu1  ;;  %2877 = vmatpush3.bf16.msra.mxu1 %v3193_v11  ;;  %v870_v5 = vmax.f32 %v806_v58, 0.0  ;;  %v611_v15 = vadd.f32 %v610_v2, %v3542_v52  ;;  %v4169_v44 = vld [vmem:[#allocation13_spill] sm:$0xff] }
 0x157   :  { %v871_v4 = vmax.f32 %v807_v33, 0.0  ;;  %v780_v14 = vadd.f32 %v3712_v42, %v684_v50  ;;  %v613_v43 = vadd.f32 %v612_v59, %v3546_v54  ;;  %2878 = vmatprep.subr.bf16.mxu1 %v3197_v48  ;;  %v841_v6 = vmax.f32 %v777_v60, 0.0 }
 0x158   :  { %v686_v34 = vadd.f32 %v685_v35, %v3610_v26  ;;  %v614_v62 = vpop.f32.mrf.mxu0  ;;  %v687_v41 = vpop.f32.mrf.mxu1  ;;  %v3807_v16 = vpack.c.bf16 %v840_v22, %v836_v29  ;;  %v3203_v26 = vld [vmem:[#allocation2 + $0x1d0] ss:$12 sps:$4 sm:$0xff]   ;;  %v3820_v2 = vpack.c.bf16 %v870_v5, %v866_v7  ;;  %v810_v38 = vadd.f32 %v3639_v39, %v611_v15 }
 0x159   :  { %v811_v32 = vadd.f32 %v3634_v37, %v613_v43  ;;  %v615_v8 = vadd.f32 %v614_v62, %v3550_v56  ;;  %v688_v54 = vadd.f32 %v687_v41, %v4168_v18  ;;  %v3813_v11 = vpack.c.bf16 %v871_v4, %v867_v9  ;;  %v3204_v56 = vld [vmem:[#allocation2 + $0x278] ss:$12 sps:$4 sm:$0xff]   ;;  %v4171_v9 = vld [vmem:[#allocation16_spill] sm:$0xff] }
 0x15a   :  { %v781_v46 = vadd.f32 %v3723_v51, %v686_v34  ;;  %v616_v49 = vpop.f32.mrf.mxu0  ;;  %v689_v25 = vpop.f32.mrf.mxu1  ;;  %v3815_v52 = vpack.c.bf16 %v841_v6, %v837_v13  ;;  %2879 = vmatpush3.bf16.msra.mxu1 %v3199_v1  ;;  %v844_v22 = vmax.f32 %v780_v14, 0.0  ;;  %v3205_v1 = vld [vmem:[#allocation2 + $0x1b8] ss:$12 sps:$4 sm:$0xff]   ;;  %v3206_v6 = vld [vmem:[#allocation2 + $0x260] ss:$12 sps:$4 sm:$0xff]   ;;  %v874_v41 = vmax.f32 %v810_v38, 0.0 }
 0x15b   :  { %v814_v58 = vadd.f32 %v3639_v39, %v615_v8  ;;  %v617_v48 = vadd.f32 %v616_v49, %v4169_v44  ;;  %v690_v20 = vadd.f32 %v689_v25, %v4170_v61  ;;  %2880 = vmatprep.subr.bf16.mxu1 %v3202_v24  ;;  %v784_v63 = vadd.f32 %v3712_v42, %v688_v54  ;;  %v4173_v7 = vld [vmem:[#allocation18_spill] sm:$0xff]  ;;  %v3207_v49 = vld [vmem:[#allocation2 + $0x1a0] ss:$12 sps:$4 sm:$0xff]   ;;  %v3208_v44 = vld [vmem:[#allocation2 + $0x248] ss:$12 sps:$4 sm:$0xff]  }
 0x15c   :  { %1663 = vmatprep.mubr.bf16.mxu0 %v3813_v11  ;;  %1736 = vmatprep.mubr.bf16.mxu1 %v3815_v52  ;;  %v693_v29 = vpop.f32.mrf.mxu1  ;;  %v875_v60 = vmax.f32 %v811_v32, 0.0  ;;  %v845_v15 = vmax.f32 %v781_v46, 0.0  ;;  %v4175_v38 = vld [vmem:[#allocation20_spill] sm:$0xff] }
 0x15d   :  { %v815_v33 = vadd.f32 %v3634_v37, %v617_v48  ;;  %v785_v50 = vadd.f32 %v3723_v51, %v690_v20  ;;  %v694_v13 = vadd.f32 %v693_v29, %v4171_v9  ;;  %1664 = vmatmul.mubr.bf16.gmra.mxu0 %v3820_v2  ;;  %1737 = vmatmul.mubr.bf16.gmra.mxu1 %v3807_v16  ;;  %v878_v39 = vmax.f32 %v814_v58, 0.0  ;;  %v4172_v37 = vld [vmem:[#allocation17_spill] sm:$0xff] }
 0x15e   :  { %v848_v59 = vmax.f32 %v784_v63, 0.0  ;;  %v695_v35 = vpop.f32.mrf.mxu1  ;;  %2881 = vmatpush3.bf16.msra.mxu1 %v3203_v26  ;;  %v4174_v26 = vld [vmem:[#allocation19_spill] sm:$0xff] }
 0x15f   :  { %v879_v5 = vmax.f32 %v815_v33, 0.0  ;;  %v849_v4 = vmax.f32 %v785_v50, 0.0  ;;  %v788_v43 = vadd.f32 %v3712_v42, %v694_v13  ;;  %v696_v24 = vadd.f32 %v695_v35, %v4172_v37  ;;  %2882 = vmatprep.subr.bf16.mxu1 %v3204_v56  ;;  %v3209_v50 = vld [vmem:[#allocation2 + $0x188] ss:$12 sps:$4 sm:$0xff]  }
 0x160   :  { %v697_v34 = vpop.f32.mrf.mxu1  ;;  %v3833_v62 = vpack.c.bf16 %v848_v59, %v844_v22  ;;  %v3844_v46 = vpack.c.bf16 %v878_v39, %v874_v41  ;;  %v4176_v22 = vld [vmem:[#allocation21_spill] sm:$0xff]  ;;  %v4178_v41 = vld [vmem:[#allocation24_spill] sm:$0xff] }
 0x161   :  { %v789_v14 = vadd.f32 %v3723_v51, %v696_v24  ;;  %v698_v32 = vadd.f32 %v697_v34, %v4173_v7  ;;  %v3837_v8 = vpack.c.bf16 %v879_v5, %v875_v60  ;;  %v3839_v54 = vpack.c.bf16 %v849_v4, %v845_v15 }
 0x162   :  { %v699_v18 = vpop.f32.mrf.mxu1  ;;  %2883 = vmatpush3.bf16.msra.mxu1 %v3205_v1  ;;  %v852_v61 = vmax.f32 %v788_v43, 0.0  ;;  %v4177_v43 = vld [vmem:[#allocation23_spill] sm:$0xff] }
 0x163   :  { %v792_v25 = vadd.f32 %v3712_v42, %v698_v32  ;;  %v700_v58 = vadd.f32 %v699_v18, %v4174_v26  ;;  %1673 = vmatprep.mubr.bf16.mxu0 %v3837_v8  ;;  %2884 = vmatprep.subr.bf16.mxu1 %v3206_v6  ;;  %v853_v29 = vmax.f32 %v789_v14, 0.0 }
 0x164   :  { %1746 = vmatprep.mubr.bf16.mxu1 %v3839_v54  ;;  %v703_v48 = vpop.f32.mrf.mxu1 }
 0x165   :  { %v856_v20 = vmax.f32 %v792_v25, 0.0  ;;  %v793_v56 = vadd.f32 %v3723_v51, %v700_v58  ;;  %v704_v63 = vadd.f32 %v703_v48, %v4175_v38  ;;  %1674 = vmatmul.mubr.bf16.gmra.mxu0 %v3844_v46  ;;  %1747 = vmatmul.mubr.bf16.gmra.mxu1 %v3833_v62  ;;  %v4180_v25 = vld [vmem:[#allocation25_spill] sm:$0xff] }
 0x166   :  { %1829 = vmatprep.mubr.bf16.mxu0 %v3658_v40  ;;  %v705_v33 = vpop.f32.mrf.mxu1  ;;  %2885 = vmatpush3.bf16.msra.mxu1 %v3207_v49 }
 0x167   :  { %v857_v9 = vmax.f32 %v793_v56, 0.0  ;;  %v796_v13 = vadd.f32 %v3712_v42, %v704_v63  ;;  %v706_v60 = vadd.f32 %v705_v33, %v4176_v22  ;;  %v3854_v39 = vpack.c.bf16 %v856_v20, %v852_v61  ;;  %2886 = vmatprep.subr.bf16.mxu1 %v3208_v44 }
 0x168   :  { %v707_v59 = vpop.f32.mrf.mxu1 }
 0x169   :  { %v797_v35 = vadd.f32 %v3723_v51, %v706_v60  ;;  %v708_v1 = vadd.f32 %v707_v59, %v3655_v10  ;;  %v3858_v5 = vpack.c.bf16 %v857_v9, %v853_v29  ;;  %v860_v6 = vmax.f32 %v796_v13, 0.0  ;;  %v4179_v10 = vld [vmem:[#allocation22_spill] sm:$0xff] }
 0x16a   :  { %v709_v4 = vpop.f32.mrf.mxu1  ;;  %2887 = vmatpush3.bf16.msra.mxu1 %v3209_v50  ;;  %v4181_v60 = vld [vmem:[#allocation26_spill] sm:$0xff] }
 0x16b   :  { %v800_v40 = vadd.f32 %v3712_v42, %v708_v1  ;;  %v710_v37 = vadd.f32 %v709_v4, %v4177_v43  ;;  %1756 = vmatprep.mubr.bf16.mxu1 %v3858_v5  ;;  %v861_v7 = vmax.f32 %v797_v35, 0.0  ;;  %v3210_v43 = vld [vmem:[#allocation5 + $0x78] sm:$0xff]  }
 0x16c   :  { %v713_v24 = vpop.f32.mrf.mxu1  ;;  %2936 = vmatprep.subr.bf16.mxu0 %v3210_v43 }
 0x16d   :  { %v864_v15 = vmax.f32 %v800_v40, 0.0  ;;  %v801_v34 = vadd.f32 %v3723_v51, %v710_v37  ;;  %v714_v14 = vadd.f32 %v713_v24, %v4178_v41  ;;  %1757 = vmatmul.mubr.bf16.gmra.mxu1 %v3854_v39  ;;  %1830 = vmatmul.mubr.bf16.vlgmr.msra.gmra.mxu0 %v4179_v10  ;;  %v3211_v37 = vld [vmem:[#allocation5 + $0x38] sm:$0xff]   ;;  %v4182_v24 = vld [vmem:[#allocation27_spill] sm:$0xff]  ;;  %v3213_v10 = vld [vmem:[#allocation5 + $0x30] sm:$0xff]  }
 0x16e   :  { %1837 = vmatprep.mubr.bf16.mxu0 %v3680_v36  ;;  %v715_v32 = vpop.f32.mrf.mxu1  ;;  %2937 = vmatpush3.bf16.msra.mxu0 %v3211_v37 }
 0x16f   :  { %v865_v18 = vmax.f32 %v801_v34, 0.0  ;;  %v804_v49 = vadd.f32 %v3712_v42, %v714_v14  ;;  %v716_v26 = vadd.f32 %v715_v32, %v4180_v25  ;;  %v3870_v58 = vpack.c.bf16 %v864_v15, %v860_v6  ;;  %v3212_v14 = vld [vmem:[#allocation5 + $0x70] sm:$0xff]   ;;  %v3215_v25 = vld [vmem:[#allocation5 + $0x28] sm:$0xff]  }
 0x170   :  { %v717_v44 = vpop.f32.mrf.mxu1  ;;  %2938 = vmatprep.subr.bf16.mxu0 %v3212_v14 }
 0x171   :  { %v805_v48 = vadd.f32 %v3723_v51, %v716_v26  ;;  %v718_v61 = vadd.f32 %v717_v44, %v3677_v55  ;;  %v3874_v20 = vpack.c.bf16 %v865_v18, %v861_v7  ;;  %v868_v29 = vmax.f32 %v804_v49, 0.0  ;;  %v3214_v49 = vld [vmem:[#allocation5 + $0x68] sm:$0xff]   ;;  %v3218_v26 = vld [vmem:[#allocation5 + $0x58] sm:$0xff]  }
 0x172   :  { %v719_v56 = vpop.f32.mrf.mxu1  ;;  %2939 = vmatpush3.bf16.msra.mxu0 %v3213_v10  ;;  %v3219_v44 = vld [vmem:[#allocation5 + $0x18] sm:$0xff]  }
 0x173   :  { %v808_v38 = vadd.f32 %v3712_v42, %v718_v61  ;;  %v720_v36 = vadd.f32 %v719_v56, %v3682_v47  ;;  %1766 = vmatprep.mubr.bf16.mxu1 %v3874_v20  ;;  %v869_v55 = vmax.f32 %v805_v48, 0.0  ;;  %2940 = vmatprep.subr.bf16.mxu0 %v3214_v49  ;;  %v3220_v48 = vld [vmem:[#allocation5 + $0x50] sm:$0xff]   ;;  %v3224_v61 = vld [vmem:[#allocation5 + $0x40] sm:$0xff]  }
 0x174   :  { %v723_v63 = vpop.f32.mrf.mxu1 }
 0x175   :  { %v872_v33 = vmax.f32 %v808_v38, 0.0  ;;  %v809_v50 = vadd.f32 %v3723_v51, %v720_v36  ;;  %v724_v9 = vadd.f32 %v723_v63, %v3691_v31  ;;  %1767 = vmatmul.mubr.bf16.gmra.mxu1 %v3870_v58  ;;  %1838 = vmatmul.mubr.bf16.gmra.mxu0 %v3684_v30 }
 0x176   :  { %1845 = vmatprep.mubr.bf16.mxu0 %v3702_v53  ;;  %v725_v13 = vpop.f32.mrf.mxu1  ;;  %2941 = vmatpush3.bf16.msra.mxu0 %v3215_v25 }
 0x177   :  { %v873_v22 = vmax.f32 %v809_v50, 0.0  ;;  %v812_v47 = vadd.f32 %v3712_v42, %v724_v9  ;;  %v726_v59 = vadd.f32 %v725_v13, %v4181_v60  ;;  %v3886_v35 = vpack.c.bf16 %v872_v33, %v868_v29  ;;  %v3234_v9 = vld [vmem:[%s4137_s6] sm:$0x7] }
 0x178   :  { %v727_v1 = vpop.f32.mrf.mxu1 }
 0x179   :  { %v813_v4 = vadd.f32 %v3723_v51, %v726_v59  ;;  %v728_v31 = vadd.f32 %v727_v1, %v3698_v3  ;;  %v3890_v40 = vpack.c.bf16 %v873_v22, %v869_v55  ;;  %v876_v15 = vmax.f32 %v812_v47, 0.0  ;;  %v4183_v3 = vld [vmem:[#allocation28_spill] sm:$0xff]  ;;  %v4184_v55 = vld [vmem:[#allocation11_spill] sm:$0xff] }
 0x17a   :  { %v729_v30 = vpop.f32.mrf.mxu1  ;;  %v4185_v13 = vsub.s32 1, %v4184_v55  ;;  %v4186_v47 = vsub.s32 0, %v4184_v55 }
 0x17b   :  { %v816_v53 = vadd.f32 %v3712_v42, %v728_v31  ;;  %v730_v6 = vadd.f32 %v729_v30, %v4182_v24  ;;  %1776 = vmatprep.mubr.bf16.mxu1 %v3890_v40  ;;  %v877_v7 = vmax.f32 %v813_v4, 0.0 }
 0x17c   :  { %v3937_v22 = vrot.slane %v3234_v9, %v4185_v13  ;;  %v3941_v60 = vrot.slane %v3234_v9, %v4186_v47 }
 0x17d   :  { %v880_v34 = vmax.f32 %v816_v53, 0.0  ;;  %v817_v41 = vadd.f32 %v3723_v51, %v730_v6  ;;  %1777 = vmatmul.mubr.bf16.gmra.mxu1 %v3886_v35  ;;  %1846 = vmatmul.mubr.bf16.gmra.mxu0 %v4183_v3  ;;  %v3216_v51 = vld [vmem:[#allocation5 + $0x60] sm:$0xff]  }
 0x17e   :  { %1853 = vmatprep.mubr.bf16.mxu0 %v3733_v17  ;;  %v3217_v17 = vld [vmem:[#allocation5 + $0x20] sm:$0xff]   ;;  %2942 = vmatprep.subr.bf16.mxu0 %v3216_v51 }
 0x17f   :  { %v881_v42 = vmax.f32 %v817_v41, 0.0  ;;  %v912_v32 = vpack.c.bf16 %v880_v34, %v876_v15  ;;  %2943 = vmatpush3.bf16.msra.mxu0 %v3217_v17 }
 0x180   :  { %2944 = vmatprep.subr.bf16.mxu0 %v3218_v26 }
 0x181   :  { %v913_v18 = vpack.c.bf16 %v881_v42, %v877_v7 }
 0x183   :  { %1786 = vmatprep.mubr.bf16.mxu1 %v913_v18  ;;  %2945 = vmatpush3.bf16.msra.mxu0 %v3219_v44 }
 0x184   :  { %2946 = vmatprep.subr.bf16.mxu0 %v3220_v48 }
 0x185   :  { %1787 = vmatmul.mubr.bf16.gmra.mxu1 %v912_v32  ;;  %1854 = vmatmul.mubr.bf16.gmra.mxu0 %v3738_v19  ;;  %v3221_v19 = vld [vmem:[#allocation5 + $0x10] sm:$0xff]  }
 0x186   :  { %1861 = vmatprep.mubr.bf16.mxu0 %v3757_v45  ;;  %1926 = vmatprep.mubr.bf16.mxu1 %v3759_v12  ;;  %v3222_v45 = vld [vmem:[#allocation5 + $0x48] sm:$0xff]  }
 0x187   :  { %2947 = vmatpush3.bf16.msra.mxu0 %v3221_v19  ;;  %v3223_v12 = vld [vmem:[#allocation5 + $0x8] sm:$0xff]  }
 0x188   :  { %2948 = vmatprep.subr.bf16.mxu0 %v3222_v45 }
 0x18b   :  { %2949 = vmatpush3.bf16.msra.mxu0 %v3223_v12 }
 0x18c   :  { %2950 = vmatprep.subr.bf16.mxu0 %v3224_v61 }
 0x18d   :  { %1862 = vmatmul.mubr.bf16.gmra.mxu0 %v3764_v0  ;;  %1927 = vmatmul.mubr.bf16.vlgmr.msra.gmra.mxu1 %v3748_v57  ;;  %v3225_v57 = vld [vmem:[#allocation5] sm:$0xff]   ;;  %v3226_v0 = vld [vmem:[#allocation5 + $0xb8] sm:$0xff]  }
 0x18e   :  { %1869 = vmatprep.mubr.bf16.mxu0 %v3785_v23  ;;  %1934 = vmatprep.mubr.bf16.mxu1 %v3787_v27  ;;  %v3228_v23 = vld [vmem:[#allocation5 + $0xa8] sm:$0xff]   ;;  %v3229_v27 = vld [vmem:[#allocation5 + $0xa0] sm:$0xff]  }
 0x18f   :  { %2951 = vmatpush3.bf16.msra.mxu0 %v3225_v57  ;;  %3016 = vmatprep.subr.bf16.mxu1 %v3226_v0 }
 0x190   :  { %3017 = vmatpush3.bf16.msra.mxu1 %v3226_v0 }
 0x195   :  { %1870 = vmatmul.mubr.bf16.gmra.mxu0 %v3791_v21  ;;  %1935 = vmatmul.mubr.bf16.gmra.mxu1 %v3778_v28  ;;  %v3227_v28 = vld [vmem:[#allocation5 + $0xb0] sm:$0xff]   ;;  %v3230_v21 = vld [vmem:[#allocation5 + $0x98] sm:$0xff]  }
 0x196   :  { %1877 = vmatprep.mubr.bf16.mxu0 %v3813_v11  ;;  %1942 = vmatprep.mubr.bf16.mxu1 %v3815_v52  ;;  %v3232_v11 = vld [vmem:[#allocation5 + $0x88] sm:$0xff]   ;;  %v3233_v52 = vld [vmem:[#allocation5 + $0x80] sm:$0xff]  }
 0x197   :  { %3018 = vmatprep.subr.bf16.mxu1 %v3227_v28 }
 0x198   :  { %3019 = vmatpush3.bf16.msra.mxu1 %v3227_v28 }
 0x199   :  { %3020 = vmatprep.subr.bf16.mxu1 %v3228_v23 }
 0x19c   :  { %3021 = vmatpush3.bf16.msra.mxu1 %v3228_v23 }
 0x19d   :  { %1878 = vmatmul.mubr.bf16.gmra.mxu0 %v3820_v2  ;;  %1943 = vmatmul.mubr.bf16.gmra.mxu1 %v3807_v16  ;;  %v3231_v16 = vld [vmem:[#allocation5 + $0x90] sm:$0xff]  }
 0x19e   :  { %1885 = vmatprep.mubr.bf16.mxu0 %v3837_v8  ;;  %1950 = vmatprep.mubr.bf16.mxu1 %v3839_v54 }
 0x19f   :  { %3022 = vmatprep.subr.bf16.mxu1 %v3229_v27 }
 0x1a0   :  { %3023 = vmatpush3.bf16.msra.mxu1 %v3229_v27 }
 0x1a1   :  { %3024 = vmatprep.subr.bf16.mxu1 %v3230_v21 }
 0x1a4   :  { %3025 = vmatpush3.bf16.msra.mxu1 %v3230_v21 }
 0x1a5   :  { %1886 = vmatmul.mubr.bf16.gmra.mxu0 %v3844_v46  ;;  %1951 = vmatmul.mubr.bf16.gmra.mxu1 %v3833_v62 }
 0x1a6   :  { %1958 = vmatprep.mubr.bf16.mxu1 %v3858_v5  ;;  %3026 = vmatprep.subr.bf16.mxu1 %v3231_v16 }
 0x1a8   :  { %3027 = vmatpush3.bf16.msra.mxu1 %v3231_v16 }
 0x1a9   :  { %3028 = vmatprep.subr.bf16.mxu1 %v3232_v11 }
 0x1ac   :  { %3029 = vmatpush3.bf16.msra.mxu1 %v3232_v11 }
 0x1ad   :  { %1959 = vmatmul.mubr.bf16.gmra.mxu1 %v3854_v39  ;;  %3030 = vmatprep.subr.bf16.mxu1 %v3233_v52 }
 0x1ae   :  { %1966 = vmatprep.mubr.bf16.mxu1 %v3874_v20 }
 0x1b0   :  { %3031 = vmatpush3.bf16.msra.mxu1 %v3233_v52 }
 0x1b5   :  { %1967 = vmatmul.mubr.bf16.gmra.mxu1 %v3870_v58 }
 0x1b6   :  { %1974 = vmatprep.mubr.bf16.mxu1 %v3890_v40 }
 0x1bd   :  { %1975 = vmatmul.mubr.bf16.gmra.mxu1 %v3886_v35 }
 0x1be   :  { %1982 = vmatprep.mubr.bf16.mxu1 %v913_v18 }
 0x1c5   :  { %1983 = vmatmul.mubr.bf16.gmra.mxu1 %v912_v32 }
 0x1ec   :  { %v1605_v2 = vpop.f32.mrf.mxu0 }
 0x1ed   :  { %v1606_v43 = vadd.f32 %v1605_v2, %v3941_v60 }
 0x1ee   :  { %v1607_v62 = vpop.f32.mrf.mxu0 }
 0x1ef   :  { %v1608_v31 = vadd.f32 %v1607_v62, %v3937_v22 }
 0x1f0   :  { %v1609_v8 = vpop.f32.mrf.mxu0 }
 0x1f1   :  { %v1610_v40 = vadd.f32 %v1609_v8, %v3941_v60 }
 0x1f2   :  { %v1611_v54 = vpop.f32.mrf.mxu0 }
 0x1f3   :  { %v1612_v53 = vadd.f32 %v1611_v54, %v3937_v22 }
 0x1f4   :  { %v1615_v46 = vpop.f32.mrf.mxu0 }
 0x1f5   :  { %v1616_v44 = vadd.f32 %v1615_v46, %v3941_v60 }
 0x1f6   :  { %v1617_v39 = vpop.f32.mrf.mxu0 }
 0x1f7   :  { %v1618_v51 = vadd.f32 %v1617_v39, %v3937_v22 }
 0x1f8   :  { %v1619_v5 = vpop.f32.mrf.mxu0 }
 0x1f9   :  { %v1620_v17 = vadd.f32 %v1619_v5, %v3941_v60 }
 0x1fa   :  { %v1621_v58 = vpop.f32.mrf.mxu0 }
 0x1fb   :  { %v1622_v12 = vadd.f32 %v1621_v58, %v3937_v22 }
 0x1fc   :  { %v1625_v20 = vpop.f32.mrf.mxu0 }
 0x1fd   :  { %v1626_v58 = vadd.f32 %v1625_v20, %v3941_v60 }
 0x1fe   :  { %v1627_v56 = vpop.f32.mrf.mxu0 }
 0x1ff   :  { %v1628_v46 = vadd.f32 %v1627_v56, %v3937_v22 }
 0x200   :  { %v1629_v38 = vpop.f32.mrf.mxu0 }
 0x201   :  { %v1630_v39 = vadd.f32 %v1629_v38, %v3941_v60 }
 0x202   :  { %v3922_v36 = vpop.f32.mrf.mxu0 }
 0x203   :  { %v1632_v47 = vadd.f32 %v3922_v36, %v3937_v22 }
 0x205   :  { %v3924_v63 = vpop.f32.mrf.mxu0 }
 0x207   :  { %v3926_v29 = vpop.f32.mrf.mxu0 }
 0x208   :  { %v1638_v36 = vadd.f32 %v3926_v29, %v3937_v22 }
 0x209   :  { %v3928_v33 = vpop.f32.mrf.mxu0 }
 0x20b   :  { %v3930_v50 = vpop.f32.mrf.mxu0 }
 0x20d   :  { %v3943_v59 = vpop.f32.mrf.mxu0  ;;  %v1718_v35 = vpop.f32.mrf.mxu1 }
 0x20e   :  { %v1719_v15 = vadd.f32 %v1718_v35, %v1606_v43 }
 0x20f   :  { %v3945_v1 = vpop.f32.mrf.mxu0  ;;  %v1720_v4 = vpop.f32.mrf.mxu1 }
 0x210   :  { %v1721_v24 = vadd.f32 %v1720_v4, %v1608_v31  ;;  %v1991_v18 = vmax.f32 %v1719_v15, 0.0 }
 0x211   :  { %v3950_v30 = vpop.f32.mrf.mxu0  ;;  %v1722_v37 = vpop.f32.mrf.mxu1 }
 0x212   :  { %v1723_v6 = vadd.f32 %v1722_v37, %v1610_v40  ;;  %v1992_v42 = vmax.f32 %v1721_v24, 0.0 }
 0x213   :  { %v3953_v34 = vpop.f32.mrf.mxu0  ;;  %v1724_v41 = vpop.f32.mrf.mxu1 }
 0x214   :  { %v1725_v3 = vadd.f32 %v1724_v41, %v1612_v53  ;;  %v1994_v14 = vmax.f32 %v1723_v6, 0.0 }
 0x215   :  { %v3955_v10 = vpop.f32.mrf.mxu0  ;;  %v1728_v7 = vpop.f32.mrf.mxu1 }
 0x216   :  { %v1995_v32 = vmax.f32 %v1725_v3, 0.0  ;;  %v2039_v48 = vpack.c.bf16 %v1994_v14, %v1991_v18  ;;  %v1729_v0 = vadd.f32 %v1728_v7, %v1616_v44  ;;  %v1640_v3 = vadd.f32 %v3928_v33, %v3941_v60 }
 0x217   :  { %v3957_v49 = vpop.f32.mrf.mxu0  ;;  %v1730_v25 = vpop.f32.mrf.mxu1  ;;  %v1636_v7 = vadd.f32 %v3924_v63, %v3941_v60 }
 0x218   :  { %v2040_v26 = vpack.c.bf16 %v1995_v32, %v1992_v42  ;;  %v1731_v61 = vadd.f32 %v1730_v25, %v1618_v51  ;;  %v1997_v62 = vmax.f32 %v1729_v0, 0.0  ;;  %v1642_v25 = vadd.f32 %v3930_v50, %v3937_v22 }
 0x219   :  { %v3962_v19 = vpop.f32.mrf.mxu0  ;;  %v1732_v45 = vpop.f32.mrf.mxu1  ;;  %v1648_v50 = vadd.f32 %v3945_v1, %v3937_v22 }
 0x21a   :  { %v1733_v57 = vadd.f32 %v1732_v45, %v1620_v17  ;;  %2294 = vmatprep.mubr.bf16.mxu0 %v2040_v26  ;;  %v1998_v52 = vmax.f32 %v1731_v61, 0.0 }
 0x21b   :  { %v3965_v28 = vpop.f32.mrf.mxu0  ;;  %v1734_v23 = vpop.f32.mrf.mxu1  ;;  %2295 = vmatmul.mubr.bf16.vlgmr.msra.gmra.mxu0 %v2039_v48 }
 0x21c   :  { %v1735_v27 = vadd.f32 %v1734_v23, %v1622_v12  ;;  %v2000_v21 = vmax.f32 %v1733_v57, 0.0 }
 0x21d   :  { %v3967_v16 = vpop.f32.mrf.mxu0  ;;  %v1738_v11 = vpop.f32.mrf.mxu1 }
 0x21e   :  { %v2001_v2 = vmax.f32 %v1735_v27, 0.0  ;;  %v2042_v9 = vpack.c.bf16 %v2000_v21, %v1997_v62  ;;  %v1739_v31 = vadd.f32 %v1738_v11, %v1626_v58  ;;  %v1650_v27 = vadd.f32 %v3950_v30, %v3941_v60 }
 0x21f   :  { %v3969_v8 = vpop.f32.mrf.mxu0  ;;  %v1740_v54 = vpop.f32.mrf.mxu1  ;;  %v1646_v11 = vadd.f32 %v3943_v59, %v3941_v60 }
 0x220   :  { %v2043_v5 = vpack.c.bf16 %v2001_v2, %v1998_v52  ;;  %v1741_v35 = vadd.f32 %v1740_v54, %v1628_v46  ;;  %v2003_v6 = vmax.f32 %v1739_v31, 0.0  ;;  %v1652_v54 = vadd.f32 %v3953_v34, %v3937_v22 }
 0x221   :  { %v3974_v55 = vpop.f32.mrf.mxu0  ;;  %v1742_v13 = vpop.f32.mrf.mxu1  ;;  %v1658_v34 = vadd.f32 %v3957_v49, %v3937_v22 }
 0x222   :  { %v1743_v4 = vadd.f32 %v1742_v13, %v1630_v39  ;;  %2302 = vmatprep.mubr.bf16.mxu0 %v2043_v5  ;;  %v2004_v53 = vmax.f32 %v1741_v35, 0.0 }
 0x223   :  { %v3978_v40 = vpop.f32.mrf.mxu0  ;;  %v1744_v43 = vpop.f32.mrf.mxu1  ;;  %2303 = vmatmul.mubr.bf16.gmra.mxu0 %v2042_v9 }
 0x224   :  { %v1745_v56 = vadd.f32 %v1744_v43, %v1632_v47  ;;  %v2006_v38 = vmax.f32 %v1743_v4, 0.0 }
 0x225   :  { %v3980_v37 = vpop.f32.mrf.mxu0  ;;  %v1748_v20 = vpop.f32.mrf.mxu1 }
 0x226   :  { %v2007_v24 = vmax.f32 %v1745_v56, 0.0  ;;  %v2045_v42 = vpack.c.bf16 %v2006_v38, %v2003_v6  ;;  %v1749_v26 = vadd.f32 %v1748_v20, %v1636_v7  ;;  %v1660_v56 = vadd.f32 %v3962_v19, %v3941_v60 }
 0x227   :  { %v3982_v15 = vpop.f32.mrf.mxu0  ;;  %v1750_v41 = vpop.f32.mrf.mxu1  ;;  %v1656_v20 = vadd.f32 %v3955_v10, %v3941_v60 }
 0x228   :  { %v2046_v14 = vpack.c.bf16 %v2007_v24, %v2004_v53  ;;  %v1751_v51 = vadd.f32 %v1750_v41, %v1638_v36  ;;  %v2009_v57 = vmax.f32 %v1749_v26, 0.0  ;;  %v1662_v41 = vadd.f32 %v3965_v28, %v3937_v22 }
 0x229   :  { %v3990_v32 = vpop.f32.mrf.mxu0  ;;  %v1752_v18 = vpop.f32.mrf.mxu1  ;;  %v1668_v28 = vadd.f32 %v3969_v8, %v3937_v22 }
 0x22a   :  { %v1753_v17 = vadd.f32 %v1752_v18, %v1640_v3  ;;  %2310 = vmatprep.mubr.bf16.mxu0 %v2046_v14  ;;  %v2010_v63 = vmax.f32 %v1751_v51, 0.0 }
 0x22b   :  { %v3994_v44 = vpop.f32.mrf.mxu0  ;;  %v1754_v29 = vpop.f32.mrf.mxu1  ;;  %2311 = vmatmul.mubr.bf16.gmra.mxu0 %v2045_v42 }
 0x22c   :  { %v1755_v33 = vadd.f32 %v1754_v29, %v1642_v25  ;;  %v2012_v48 = vmax.f32 %v1753_v17, 0.0 }
 0x22d   :  { %v1758_v45 = vpop.f32.mrf.mxu1  ;;  %v3996_v12 = vpop.f32.mrf.mxu0 }
 0x22e   :  { %v2013_v61 = vmax.f32 %v1755_v33, 0.0  ;;  %v2048_v52 = vpack.c.bf16 %v2012_v48, %v2009_v57  ;;  %v1759_v5 = vadd.f32 %v1758_v45, %v1646_v11  ;;  %v1670_v33 = vadd.f32 %v3974_v55, %v3941_v60 }
 0x22f   :  { %v1760_v0 = vpop.f32.mrf.mxu1  ;;  %v3998_v23 = vpop.f32.mrf.mxu0  ;;  %v1666_v45 = vadd.f32 %v3967_v16, %v3941_v60 }
 0x230   :  { %v2049_v21 = vpack.c.bf16 %v2013_v61, %v2010_v63  ;;  %v1761_v46 = vadd.f32 %v1760_v0, %v1648_v50  ;;  %v2015_v4 = vmax.f32 %v1759_v5, 0.0  ;;  %v1672_v0 = vadd.f32 %v3978_v40, %v3937_v22 }
 0x231   :  { %v1762_v2 = vpop.f32.mrf.mxu1  ;;  %v4006_v62 = vpop.f32.mrf.mxu0  ;;  %v1678_v40 = vadd.f32 %v3982_v15, %v3937_v22 }
 0x232   :  { %v1763_v39 = vadd.f32 %v1762_v2, %v1650_v27  ;;  %2318 = vmatprep.mubr.bf16.mxu0 %v2049_v21  ;;  %v2016_v59 = vmax.f32 %v1761_v46, 0.0 }
 0x233   :  { %v1764_v58 = vpop.f32.mrf.mxu1  ;;  %v4010_v1 = vpop.f32.mrf.mxu0  ;;  %2319 = vmatmul.mubr.bf16.gmra.mxu0 %v2048_v52 }
 0x234   :  { %v1765_v30 = vadd.f32 %v1764_v58, %v1652_v54  ;;  %v2018_v9 = vmax.f32 %v1763_v39, 0.0 }
 0x235   :  { %v1768_v13 = vpop.f32.mrf.mxu1  ;;  %v4012_v47 = vpop.f32.mrf.mxu0 }
 0x236   :  { %v2019_v35 = vmax.f32 %v1765_v30, 0.0  ;;  %v2051_v53 = vpack.c.bf16 %v2018_v9, %v2015_v4  ;;  %v1769_v14 = vadd.f32 %v1768_v13, %v1656_v20  ;;  %v1680_v30 = vadd.f32 %v3990_v32, %v3941_v60 }
 0x237   :  { %v1770_v31 = vpop.f32.mrf.mxu1  ;;  %v4014_v43 = vpop.f32.mrf.mxu0  ;;  %v1676_v13 = vadd.f32 %v3980_v37, %v3941_v60  ;;  %v2826_v37 = vadd.f32 %v3998_v23, %v3996_v12 }
 0x238   :  { %v2052_v38 = vpack.c.bf16 %v2019_v35, %v2016_v59  ;;  %v1771_v36 = vadd.f32 %v1770_v31, %v1658_v34  ;;  %v2021_v17 = vmax.f32 %v1769_v14, 0.0  ;;  %v1682_v31 = vadd.f32 %v3994_v44, %v3937_v22 }
 0x239   :  { %v1772_v24 = vpop.f32.mrf.mxu1  ;;  %v4022_v6 = vpop.f32.mrf.mxu0  ;;  %v2829_v14 = vadd.f32 %v4010_v1, %v4006_v62  ;;  %v2832_v62 = vadd.f32 %v4014_v43, %v4012_v47 }
 0x23a   :  { %v1773_v3 = vadd.f32 %v1772_v24, %v1660_v56  ;;  %2326 = vmatprep.mubr.bf16.mxu0 %v2052_v38  ;;  %v2022_v10 = vmax.f32 %v1771_v36, 0.0 }
 0x23b   :  { %v1774_v7 = vpop.f32.mrf.mxu1  ;;  %v4026_v49 = vpop.f32.mrf.mxu0  ;;  %2327 = vmatmul.mubr.bf16.gmra.mxu0 %v2051_v53 }
 0x23c   :  { %v1775_v19 = vadd.f32 %v1774_v7, %v1662_v41  ;;  %v2024_v42 = vmax.f32 %v1773_v3, 0.0 }
 0x23d   :  { %v1778_v18 = vpop.f32.mrf.mxu1  ;;  %v4028_v25 = vpop.f32.mrf.mxu0 }
 0x23e   :  { %v2025_v51 = vmax.f32 %v1775_v19, 0.0  ;;  %v2054_v63 = vpack.c.bf16 %v2024_v42, %v2021_v17  ;;  %v1779_v21 = vadd.f32 %v1778_v18, %v1666_v45 }
 0x23f   :  { %v1780_v26 = vpop.f32.mrf.mxu1  ;;  %v4030_v29 = vpop.f32.mrf.mxu0 }
 0x240   :  { %v2055_v48 = vpack.c.bf16 %v2025_v51, %v2022_v10  ;;  %v1781_v50 = vadd.f32 %v1780_v26, %v1668_v28  ;;  %v2027_v39 = vmax.f32 %v1779_v21, 0.0  ;;  %v4187_v51 = vld [vmem:[#allocation12_spill] sm:$0xff] }
 0x241   :  { %v1782_v61 = vpop.f32.mrf.mxu1  ;;  %v4038_v57 = vpop.f32.mrf.mxu0  ;;  %v1832_v17 = vadd.f32 %v2826_v37, %v4187_v51  ;;  %v1835_v12 = vadd.f32 %v2829_v14, %v4187_v51 }
 0x242   :  { %v1783_v27 = vadd.f32 %v1782_v61, %v1670_v33  ;;  %2334 = vmatprep.mubr.bf16.mxu0 %v2055_v48  ;;  %v2028_v16 = vmax.f32 %v1781_v50, 0.0 }
 0x243   :  { %v1784_v11 = vpop.f32.mrf.mxu1  ;;  %v4042_v8 = vpop.f32.mrf.mxu0  ;;  %2335 = vmatmul.mubr.bf16.gmra.mxu0 %v2054_v63  ;;  %v2835_v63 = vadd.f32 %v4026_v49, %v4022_v6  ;;  %v2838_v6 = vadd.f32 %v4030_v29, %v4028_v25 }
 0x244   :  { %v1785_v55 = vadd.f32 %v1784_v11, %v1672_v0  ;;  %v2030_v52 = vmax.f32 %v1783_v27, 0.0  ;;  %v1840_v11 = vadd.f32 %v2832_v62, %v4187_v51 }
 0x245   :  { %v1788_v2 = vpop.f32.mrf.mxu1  ;;  %v4044_v54 = vpop.f32.mrf.mxu0 }
 0x246   :  { %v2031_v46 = vmax.f32 %v1785_v55, 0.0  ;;  %v2057_v59 = vpack.c.bf16 %v2030_v52, %v2027_v39  ;;  %v1789_v38 = vadd.f32 %v1788_v2, %v1676_v13  ;;  %v1843_v2 = vadd.f32 %v2835_v63, %v4187_v51 }
 0x247   :  { %v1790_v5 = vpop.f32.mrf.mxu1  ;;  %v4046_v58 = vpop.f32.mrf.mxu0 }
 0x248   :  { %v2058_v9 = vpack.c.bf16 %v2031_v46, %v2028_v16  ;;  %v1791_v34 = vadd.f32 %v1790_v5, %v1678_v40  ;;  %v2033_v3 = vmax.f32 %v1789_v38, 0.0  ;;  %v2841_v5 = vadd.f32 %v4042_v8, %v4038_v57 }
 0x249   :  { %v1792_v35 = vpop.f32.mrf.mxu1  ;;  %v4054_v4 = vpop.f32.mrf.mxu0 }
 0x24a   :  { %v1793_v56 = vadd.f32 %v1792_v35, %v1680_v30  ;;  %2342 = vmatprep.mubr.bf16.mxu0 %v2058_v9  ;;  %v2034_v41 = vmax.f32 %v1791_v34, 0.0  ;;  %v1848_v35 = vadd.f32 %v2838_v6, %v4187_v51 }
 0x24b   :  { %v1794_v20 = vpop.f32.mrf.mxu1  ;;  %v4058_v15 = vpop.f32.mrf.mxu0  ;;  %2343 = vmatmul.mubr.bf16.gmra.mxu0 %v2057_v59 }
 0x24c   :  { %v1795_v32 = vadd.f32 %v1794_v20, %v1682_v31  ;;  %v2036_v53 = vmax.f32 %v1793_v56, 0.0  ;;  %v1851_v56 = vadd.f32 %v2841_v5, %v4187_v51 }
 0x24d   :  { %v4060_v24 = vpop.f32.mrf.mxu0  ;;  %v2888_v60 = vpop.f32.mrf.mxu1 }
 0x24e   :  { %v2037_v36 = vmax.f32 %v1795_v32, 0.0  ;;  %v2060_v42 = vpack.c.bf16 %v2036_v53, %v2033_v3  ;;  %v2844_v32 = vadd.f32 %v4046_v58, %v4044_v54  ;;  %v2847_v53 = vadd.f32 %v4058_v15, %v4054_v4 }
 0x24f   :  { %v4064_v22 = vpop.f32.mrf.mxu0  ;;  %v2889_v44 = vpop.f32.mrf.mxu1 }
 0x250   :  { %v2061_v7 = vpack.c.bf16 %v2037_v36, %v2034_v41  ;;  %v2890_v19 = vadd.f32 %v2889_v44, %v2888_v60  ;;  %v1856_v44 = vadd.f32 %v2844_v32, %v4187_v51 }
 0x251   :  { %v4068_v18 = vpop.f32.mrf.mxu0  ;;  %v2891_v10 = vpop.f32.mrf.mxu1 }
 0x252   :  { %2350 = vmatprep.mubr.bf16.mxu0 %v2061_v7  ;;  %v1929_v23 = vadd.f32 %v2890_v19, %v1832_v17  ;;  %v1859_v19 = vadd.f32 %v2847_v53, %v4187_v51  ;;  %v2850_v17 = vadd.f32 %v4064_v22, %v4060_v24 }
 0x253   :  { %v2892_v26 = vpop.f32.mrf.mxu1  ;;  %2351 = vmatmul.mubr.bf16.gmra.mxu0 %v2060_v42  ;;  %v2852_v33 = vpop.f32.mrf.mxu0 }
 0x254   :  { %v2893_v28 = vadd.f32 %v2892_v26, %v2891_v10  ;;  %v1993_v61 = vmax.f32 %v1929_v23, 0.0  ;;  %v2853_v26 = vadd.f32 %v2852_v33, %v4068_v18 }
 0x255   :  { %v2894_v48 = vpop.f32.mrf.mxu1  ;;  %v4076_v27 = vpop.f32.mrf.mxu0 }
 0x256   :  { %v1932_v1 = vadd.f32 %v2893_v28, %v1835_v12 }
 0x257   :  { %v2895_v45 = vpop.f32.mrf.mxu1  ;;  %v2855_v47 = vpop.f32.mrf.mxu0 }
 0x258   :  { %v1996_v0 = vmax.f32 %v1932_v1, 0.0  ;;  %v2896_v50 = vadd.f32 %v2895_v45, %v2894_v48  ;;  %v1864_v1 = vadd.f32 %v2850_v17, %v4187_v51  ;;  %v2856_v22 = vadd.f32 %v2855_v47, %v4076_v27 }
 0x259   :  { %v2897_v21 = vpop.f32.mrf.mxu1  ;;  %v2857_v13 = vpop.f32.mrf.mxu0 }
 0x25a   :  { %v2041_v55 = vpack.c.bf16 %v1996_v0, %v1993_v61  ;;  %v1937_v16 = vadd.f32 %v2896_v50, %v1840_v11  ;;  %v1867_v61 = vadd.f32 %v2853_v26, %v4187_v51 }
 0x25b   :  { %v2898_v52 = vpop.f32.mrf.mxu1  ;;  %v2858_v25 = vpop.f32.mrf.mxu0 }
 0x25c   :  { %v2899_v46 = vadd.f32 %v2898_v52, %v2897_v21  ;;  %3032 = vmatprep.mubr.bf16.mxu1 %v2041_v55  ;;  %v1999_v40 = vmax.f32 %v1937_v16, 0.0  ;;  %v2859_v33 = vadd.f32 %v2858_v25, %v2857_v13 }
 0x25d   :  { %v2900_v43 = vpop.f32.mrf.mxu1  ;;  %v2860_v36 = vpop.f32.mrf.mxu0 }
 0x25e   :  { %v1940_v49 = vadd.f32 %v2899_v46, %v1843_v2 }
 0x25f   :  { %v2901_v39 = vpop.f32.mrf.mxu1  ;;  %v2861_v54 = vpop.f32.mrf.mxu0 }
 0x260   :  { %v2002_v30 = vmax.f32 %v1940_v49, 0.0  ;;  %v2902_v9 = vadd.f32 %v2901_v39, %v2900_v43  ;;  %v1872_v43 = vadd.f32 %v2856_v22, %v4187_v51  ;;  %v1875_v39 = vadd.f32 %v2859_v33, %v4187_v51 }
 0x261   :  { %v2903_v59 = vpop.f32.mrf.mxu1  ;;  %v2863_v48 = vpop.f32.mrf.mxu0  ;;  %v2862_v27 = vadd.f32 %v2861_v54, %v2860_v36 }
 0x262   :  { %v2044_v31 = vpack.c.bf16 %v2002_v30, %v1999_v40  ;;  %v1945_v38 = vadd.f32 %v2902_v9, %v1848_v35 }
 0x263   :  { %v2904_v34 = vpop.f32.mrf.mxu1  ;;  %v2864_v21 = vpop.f32.mrf.mxu0 }
 0x264   :  { %v2905_v20 = vadd.f32 %v2904_v34, %v2903_v59  ;;  %3033 = vmatmul.mubr.bf16.vlgmr.msra.gmra.mxu1 %v2044_v31  ;;  %v2005_v60 = vmax.f32 %v1945_v38, 0.0  ;;  %v2865_v13 = vadd.f32 %v2864_v21, %v2863_v48 }
 0x265   :  { %v2906_v29 = vpop.f32.mrf.mxu1  ;;  %v2866_v16 = vpop.f32.mrf.mxu0 }
 0x266   :  { %v1948_v57 = vadd.f32 %v2905_v20, %v1851_v56  ;;  %v1880_v20 = vadd.f32 %v2862_v27, %v4187_v51  ;;  %v1883_v32 = vadd.f32 %v2865_v13, %v4187_v51 }
 0x267   :  { %v2907_v8 = vpop.f32.mrf.mxu1  ;;  %v2867_v30 = vpop.f32.mrf.mxu0 }
 0x268   :  { %v2008_v37 = vmax.f32 %v1948_v57, 0.0  ;;  %v2908_v41 = vadd.f32 %v2907_v8, %v2906_v29 }
 0x269   :  { %v2909_v3 = vpop.f32.mrf.mxu1  ;;  %v2869_v56 = vpop.f32.mrf.mxu0 }
 0x26a   :  { %v2047_v14 = vpack.c.bf16 %v2008_v37, %v2005_v60  ;;  %v1953_v42 = vadd.f32 %v2908_v41, %v1856_v44  ;;  %v2868_v37 = vadd.f32 %v2867_v30, %v2866_v16 }
 0x26b   :  { %v2910_v7 = vpop.f32.mrf.mxu1  ;;  %v2870_v53 = vpop.f32.mrf.mxu0 }
 0x26c   :  { %v2911_v10 = vadd.f32 %v2910_v7, %v2909_v3  ;;  %3036 = vmatprep.mubr.bf16.mxu1 %v2047_v14  ;;  %v2011_v12 = vmax.f32 %v1953_v42, 0.0  ;;  %v2871_v3 = vadd.f32 %v2870_v53, %v2869_v56  ;;  %v1888_v42 = vadd.f32 %v2868_v37, %v4187_v51 }
 0x26d   :  { %v2912_v58 = vpop.f32.mrf.mxu1 }
 0x26e   :  { %v1956_v4 = vadd.f32 %v2911_v10, %v1859_v19 }
 0x26f   :  { %v2913_v15 = vpop.f32.mrf.mxu1 }
 0x270   :  { %v2014_v23 = vmax.f32 %v1956_v4, 0.0  ;;  %v2914_v28 = vadd.f32 %v2913_v15, %v2912_v58  ;;  %v1891_v58 = vadd.f32 %v2871_v3, %v4187_v51 }
 0x271   :  { %v2915_v62 = vpop.f32.mrf.mxu1 }
 0x272   :  { %v2050_v45 = vpack.c.bf16 %v2014_v23, %v2011_v12  ;;  %v1961_v0 = vadd.f32 %v2914_v28, %v1864_v1 }
 0x273   :  { %v2916_v63 = vpop.f32.mrf.mxu1 }
 0x274   :  { %v2917_v50 = vadd.f32 %v2916_v63, %v2915_v62  ;;  %3037 = vmatmul.mubr.bf16.gmra.mxu1 %v2050_v45  ;;  %v2017_v55 = vmax.f32 %v1961_v0, 0.0 }
 0x275   :  { %v2918_v24 = vpop.f32.mrf.mxu1 }
 0x276   :  { %v1964_v11 = vadd.f32 %v2917_v50, %v1867_v61 }
 0x277   :  { %v2919_v18 = vpop.f32.mrf.mxu1 }
 0x278   :  { %v2020_v52 = vmax.f32 %v1964_v11, 0.0  ;;  %v2920_v2 = vadd.f32 %v2919_v18, %v2918_v24 }
 0x279   :  { %v2921_v46 = vpop.f32.mrf.mxu1 }
 0x27a   :  { %v2053_v6 = vpack.c.bf16 %v2020_v52, %v2017_v55  ;;  %v1969_v5 = vadd.f32 %v2920_v2, %v1872_v43 }
 0x27b   :  { %v2922_v49 = vpop.f32.mrf.mxu1 }
 0x27c   :  { %v2923_v40 = vadd.f32 %v2922_v49, %v2921_v46  ;;  %3040 = vmatprep.mubr.bf16.mxu1 %v2053_v6  ;;  %v2023_v35 = vmax.f32 %v1969_v5, 0.0 }
 0x27d   :  { %v2924_v9 = vpop.f32.mrf.mxu1 }
 0x27e   :  { %v1972_v47 = vadd.f32 %v2923_v40, %v1875_v39  ;;  %v4107_v40 = vld [vmem:[%s4139_s8] ss:$0 sm:$0xff]  ;;  %s3309_s8 = smov [#allocation7]  }
 0x27f   :  { %v2925_v59 = vpop.f32.mrf.mxu1  ;;  %s2541_s23 = sshll.u32 %s3309_s8, 4  ;;  %s2542_s23 = int_to_ptr.vmem [resolvable:$true] %s2541_s23 }
 0x280   :  { %v2026_v31 = vmax.f32 %v1972_v47, 0.0  ;;  %v2926_v34 = vadd.f32 %v2925_v59, %v2924_v9  ;;  %s3275_s2 = scalar_lea.vmem %s2542_s23, 1024  ;;  %p3280_p11 = scmp.lt.s32.totalorder %s2542_s23, %s2542_s23 }
 0x281   :  { %v2927_v38 = vpop.f32.mrf.mxu1  ;;  %p3276_p10 = scmp.ne.s32.totalorder %s2542_s23, %s3275_s2  ;;  %p3281_p12 = scmp.lt.s32.totalorder %s3275_s2, %s3275_s2 }
 0x282   :  { %v2056_v25 = vpack.c.bf16 %v2026_v31, %v2023_v35  ;;  %v1977_v57 = vadd.f32 %v2926_v34, %v1880_v20 }
 0x283   :  { %v2928_v29 = vpop.f32.mrf.mxu1  ;;  %p3282_p13 = por %p3281_p12, %p3280_p11 }
 0x284   :  { %v2929_v8 = vadd.f32 %v2928_v29, %v2927_v38  ;;  %3041 = vmatmul.mubr.bf16.gmra.mxu1 %v2056_v25  ;;  %v2029_v44 = vmax.f32 %v1977_v57, 0.0 }
 0x285   :  { %v2930_v60 = vpop.f32.mrf.mxu1  ;;  %p3283_p0 = pnand %p3282_p13, %p3276_p10 }
 0x286   :  { %v1980_v41 = vadd.f32 %v2929_v8, %v1883_v32 }
 0x287   :  { %v2931_v36 = vpop.f32.mrf.mxu1 }
 0x288   :  { %v2032_v14 = vmax.f32 %v1980_v41, 0.0  ;;  %v2932_v7 = vadd.f32 %v2931_v36, %v2930_v60 }
 0x289   :  { %v2933_v19 = vpop.f32.mrf.mxu1 }
 0x28a   :  { %v2059_v10 = vpack.c.bf16 %v2032_v14, %v2029_v44  ;;  %v1985_v17 = vadd.f32 %v2932_v7, %v1888_v42 }
 0x28b   :  { %v2934_v54 = vpop.f32.mrf.mxu1 }
 0x28c   :  { %v2935_v4 = vadd.f32 %v2934_v54, %v2933_v19  ;;  %3044 = vmatprep.mubr.bf16.mxu1 %v2059_v10  ;;  %v2035_v26 = vmax.f32 %v1985_v17, 0.0 }
 0x28e   :  { %v1988_v15 = vadd.f32 %v2935_v4, %v1891_v58 }
 0x290   :  { %v2038_v12 = vmax.f32 %v1988_v15, 0.0 }
 0x292   :  { %v2062_v23 = vpack.c.bf16 %v2038_v12, %v2035_v26 }
 0x294   :  { %3045 = vmatmul.mubr.bf16.gmra.mxu1 %v2062_v23 }
 0x2db   :  { %v2952_v28 = vpop.f32.mrf.mxu0 }
 0x2dd   :  { %v2953_v48 = vpop.f32.mrf.mxu0 }
 0x2de   :  { %v2954_v39 = vadd.f32 %v2953_v48, %v2952_v28 }
 0x2df   :  { %v2955_v62 = vpop.f32.mrf.mxu0 }
 0x2e0   :  { %v2297_v35 = vadd.f32 %v2954_v39, %v4107_v40 }
 0x2e1   :  { %v2956_v1 = vpop.f32.mrf.mxu0 }
 0x2e2   :  { %v2957_v5 = vadd.f32 %v2956_v1, %v2955_v62 }
 0x2e3   :  { %v2958_v45 = vpop.f32.mrf.mxu0 }
 0x2e4   :  { %v2300_v34 = vadd.f32 %v2957_v5, %v4107_v40 }
 0x2e5   :  { %v2959_v63 = vpop.f32.mrf.mxu0 }
 0x2e6   :  { %v2960_v46 = vadd.f32 %v2959_v63, %v2958_v45 }
 0x2e7   :  { %v2961_v61 = vpop.f32.mrf.mxu0 }
 0x2e8   :  { %v2305_v9 = vadd.f32 %v2960_v46, %v4107_v40 }
 0x2e9   :  { %v2962_v0 = vpop.f32.mrf.mxu0 }
 0x2ea   :  { %v2963_v43 = vadd.f32 %v2962_v0, %v2961_v61 }
 0x2eb   :  { %v2964_v50 = vpop.f32.mrf.mxu0 }
 0x2ec   :  { %v2308_v27 = vadd.f32 %v2963_v43, %v4107_v40 }
 0x2ed   :  { %v2965_v21 = vpop.f32.mrf.mxu0 }
 0x2ee   :  { %v2966_v41 = vadd.f32 %v2965_v21, %v2964_v50 }
 0x2ef   :  { %v2967_v24 = vpop.f32.mrf.mxu0 }
 0x2f0   :  { %v2313_v10 = vadd.f32 %v2966_v41, %v4107_v40 }
 0x2f1   :  { %v2968_v51 = vpop.f32.mrf.mxu0 }
 0x2f2   :  { %v2969_v36 = vadd.f32 %v2968_v51, %v2967_v24 }
 0x2f3   :  { %v2970_v22 = vpop.f32.mrf.mxu0 }
 0x2f4   :  { %v2316_v58 = vadd.f32 %v2969_v36, %v4107_v40 }
 0x2f5   :  { %v2971_v11 = vpop.f32.mrf.mxu0 }
 0x2f6   :  { %v2972_v8 = vadd.f32 %v2971_v11, %v2970_v22 }
 0x2f7   :  { %v2973_v18 = vpop.f32.mrf.mxu0 }
 0x2f8   :  { %v2321_v44 = vadd.f32 %v2972_v8, %v4107_v40 }
 0x2f9   :  { %v2974_v33 = vpop.f32.mrf.mxu0 }
 0x2fa   :  { %v2975_v53 = vadd.f32 %v2974_v33, %v2973_v18 }
 0x2fb   :  { %v2976_v55 = vpop.f32.mrf.mxu0 }
 0x2fc   :  { %v2324_v14 = vadd.f32 %v2975_v53, %v4107_v40 }
 0x2fd   :  { %v2977_v52 = vpop.f32.mrf.mxu0 }
 0x2fe   :  { %v2978_v63 = vadd.f32 %v2977_v52, %v2976_v55 }
 0x2ff   :  { %v2979_v2 = vpop.f32.mrf.mxu0 }
 0x300   :  { %v2329_v11 = vadd.f32 %v2978_v63, %v4107_v40 }
 0x301   :  { %v2980_v16 = vpop.f32.mrf.mxu0 }
 0x302   :  { %v2981_v61 = vadd.f32 %v2980_v16, %v2979_v2 }
 0x303   :  { %v2982_v6 = vpop.f32.mrf.mxu0 }
 0x304   :  { %v2332_v33 = vadd.f32 %v2981_v61, %v4107_v40 }
 0x305   :  { %v2983_v47 = vpop.f32.mrf.mxu0 }
 0x306   :  { %v2984_v48 = vadd.f32 %v2983_v47, %v2982_v6 }
 0x307   :  { %v2985_v29 = vpop.f32.mrf.mxu0 }
 0x308   :  { %v2337_v50 = vadd.f32 %v2984_v48, %v4107_v40 }
 0x309   :  { %v2986_v57 = vpop.f32.mrf.mxu0 }
 0x30a   :  { %v2987_v62 = vadd.f32 %v2986_v57, %v2985_v29 }
 0x30b   :  { %v2988_v60 = vpop.f32.mrf.mxu0 }
 0x30c   :  { %v2340_v21 = vadd.f32 %v2987_v62, %v4107_v40 }
 0x30d   :  { %v2989_v7 = vpop.f32.mrf.mxu0 }
 0x30f   :  { %v2991_v12 = vpop.f32.mrf.mxu0 }
 0x311   :  { %v2992_v28 = vpop.f32.mrf.mxu0 }
 0x313   :  { %v2994_v1 = vpop.f32.mrf.mxu0 }
 0x315   :  { %v2995_v24 = vpop.f32.mrf.mxu0 }
 0x316   :  { %v2996_v2 = vadd.f32 %v2995_v24, %v2994_v1 }
 0x317   :  { %v2997_v39 = vpop.f32.mrf.mxu0 }
 0x318   :  { %v2353_v47 = vadd.f32 %v2996_v2, %v4107_v40 }
 0x319   :  { %v2998_v52 = vpop.f32.mrf.mxu0 }
 0x31a   :  { %v2999_v16 = vadd.f32 %v2998_v52, %v2997_v39 }
 0x324   :  { %v3034_v49 = vpop.f32.mrf.mxu1 }
 0x325   :  { %v2402_v13 = vadd.f32 %v3034_v49, %v2305_v9  ;;  %v2993_v9 = vadd.f32 %v2992_v28, %v2991_v12 }
 0x326   :  { %v2393_v30 = vpop.f32.mrf.mxu1 }
 0x327   :  { %v2394_v38 = vadd.f32 %v2393_v30, %v2297_v35  ;;  %v2990_v30 = vadd.f32 %v2989_v7, %v2988_v60 }
 0x328   :  { %v3035_v59 = vpop.f32.mrf.mxu1 }
 0x329   :  { %v2405_v31 = vadd.f32 %v3035_v59, %v2308_v27  ;;  %v2356_v59 = vadd.f32 %v2999_v16, %v4107_v40 }
 0x32a   :  { %v2396_v56 = vpop.f32.mrf.mxu1 }
 0x32b   :  { %v2769_v20 = vpack.c.bf16 %v2405_v31, %v2402_v13  ;;  %v2397_v25 = vadd.f32 %v2396_v56, %v2300_v34  ;;  %v2345_v31 = vadd.f32 %v2990_v30, %v4107_v40  ;;  %v2348_v56 = vadd.f32 %v2993_v9, %v4107_v40 }
 0x32d   :  { %2801 = vst [vmem:[#allocation7 + $0x8] sm:$0xff] %v2769_v20   ;;  %v2764_v32 = vpack.c.bf16 %v2397_v25, %v2394_v38 }
 0x32f   :  { %2765 = vst [vmem:[#allocation7] sm:$0xff] %v2764_v32  }
 0x334   :  { %v3038_v37 = vpop.f32.mrf.mxu1 }
 0x335   :  { %v2418_v42 = vadd.f32 %v3038_v37, %v2321_v44 }
 0x336   :  { %v2409_v3 = vpop.f32.mrf.mxu1 }
 0x337   :  { %v2410_v4 = vadd.f32 %v2409_v3, %v2313_v10 }
 0x338   :  { %v3039_v19 = vpop.f32.mrf.mxu1 }
 0x339   :  { %v2421_v54 = vadd.f32 %v3039_v19, %v2324_v14 }
 0x33a   :  { %v2412_v17 = vpop.f32.mrf.mxu1 }
 0x33b   :  { %v2779_v15 = vpack.c.bf16 %v2421_v54, %v2418_v42  ;;  %v2413_v26 = vadd.f32 %v2412_v17, %v2316_v58 }
 0x33d   :  { %2803 = vst [vmem:[#allocation7 + $0x18] sm:$0xff] %v2779_v15   ;;  %v2774_v23 = vpack.c.bf16 %v2413_v26, %v2410_v4 }
 0x33f   :  { %2802 = vst [vmem:[#allocation7 + $0x10] sm:$0xff] %v2774_v23  }
 0x344   :  { %v3042_v45 = vpop.f32.mrf.mxu1 }
 0x345   :  { %v2434_v22 = vadd.f32 %v3042_v45, %v2337_v50 }
 0x346   :  { %v2425_v0 = vpop.f32.mrf.mxu1 }
 0x347   :  { %v2426_v43 = vadd.f32 %v2425_v0, %v2329_v11 }
 0x348   :  { %v3043_v51 = vpop.f32.mrf.mxu1 }
 0x349   :  { %v2437_v18 = vadd.f32 %v3043_v51, %v2340_v21 }
 0x34a   :  { %v2428_v46 = vpop.f32.mrf.mxu1 }
 0x34b   :  { %v2789_v6 = vpack.c.bf16 %v2437_v18, %v2434_v22  ;;  %v2429_v49 = vadd.f32 %v2428_v46, %v2332_v33 }
 0x34d   :  { %2805 = vst [vmem:[#allocation7 + $0x28] sm:$0xff] %v2789_v6   ;;  %v2784_v55 = vpack.c.bf16 %v2429_v49, %v2426_v43 }
 0x34f   :  { %2804 = vst [vmem:[#allocation7 + $0x20] sm:$0xff] %v2784_v55  }
 0x354   :  { %v3046_v5 = vpop.f32.mrf.mxu1 }
 0x355   :  { %v2450_v35 = vadd.f32 %v3046_v5, %v2353_v47 }
 0x356   :  { %v2441_v27 = vpop.f32.mrf.mxu1 }
 0x357   :  { %v2442_v20 = vadd.f32 %v2441_v27, %v2345_v31 }
 0x358   :  { %v3047_v13 = vpop.f32.mrf.mxu1 }
 0x359   :  { %v2453_v34 = vadd.f32 %v3047_v13, %v2356_v59 }
 0x35a   :  { %v2444_v38 = vpop.f32.mrf.mxu1 }
 0x35b   :  { %v2799_v25 = vpack.c.bf16 %v2453_v34, %v2450_v35  ;;  %v2445_v29 = vadd.f32 %v2444_v38, %v2348_v56 }
 0x35d   :  { %2807 = vst [vmem:[#allocation7 + $0x38] sm:$0xff] %v2799_v25   ;;  %v2794_v32 = vpack.c.bf16 %v2445_v29, %v2442_v20 }
 0x35f   :  { %2806 = vst [vmem:[#allocation7 + $0x30] sm:$0xff] %v2794_v32  }
 0x360   :  { %3286 = shalt.err (!%p3283_p0)
}
 0x361   :  { %2547 = dma.vmem_to_hbm [thread:$0]  %s2542_s23, 1024, %s4140_s9, [#allocation4], %s3305_s19, %s3305_s19, %s3306_s20  }
 0x362   :  { %3299 = dma.done.wait [#allocation4], 1024  }
 0x363   :  { %3300 = vsyncadd [#allocation4], 4294966272 }
 0x364   :  { %2551 = vsyncpa [#allocation3], 1 }
 0x365   :  { %2552 = vsyncpa [#allocation6], 1 }
 0x366   :  { %2553 = vsyncpa [#allocation4], 1 }

</bundles_post_ra>
